<compile_context>
chip_gen: v7x
topology: tpu7x:2x2x1
jax: 0.10.0
libtpu: 0.0.40
codegen_flags: <defaults>
</compile_context>

<pallas_src>
import functools

import jax
import jax.numpy as jnp
from jax.experimental import pallas as pl
from jax.experimental.pallas import tpu as pltpu


PATCH = 4                    # patch_emb patch size
EMB_D = 32                   # embedding / mamba channel dim
STYLE_IN = 32                # style feature input dim
DEC_C = 3 * PATCH * PATCH    # decoder output channels before pixel shuffle
LANES = 128                  # vreg lane width (MSE reduction layout)

# static encoder config: (name, cout, stride); all encoder convs 3x3, pad 1, ReLU
ENC_CFG = (("e1", 8, 1), ("e2", 16, 2), ("e3", 32, 2), ("e4", 32, 2))


def _round_up(x, m):
    return (x + m - 1) // m * m


def _tpu_vmem_capacity():
    try:
        return int(pltpu.get_tpu_info().vmem_capacity_bytes)
    except Exception:                      # query unavailable -> conservative default
        return 64 * 1024 * 1024


_VMEM_CAP = _tpu_vmem_capacity()
# generation-aware budgets: big tiles / big scoped VMEM on 128 MiB parts
# (v5e/v6e), tighter on 64 MiB v7x.
VMEM_LIMIT = int(min((_VMEM_CAP * 3) // 4, 100 * 1024 * 1024))
MAX_ROWS = 4096 if _VMEM_CAP >= 96 * 1024 * 1024 else 2048


def _pick_tm(m):
    """Row-tile size: multiple of 8 sublanes, capped by the VMEM-derived row
    budget, and (when possible) small enough that the 'parallel' grid axis has
    >= 2 blocks so both v7x TensorCores get work."""
    if m <= 8:
        return 8
    half = _round_up((m + 1) // 2, 8)
    return max(8, min(MAX_ROWS, half))


# ------------------------------ conv kernel --------------------------------

def _im2col(x_nhwc, kh, kw, stride, pad):
    """Zero-pad + gather the kh*kw shifted windows into the channel dim.
    Pure data-movement glue; the contraction K stays the REAL kh*kw*cin."""
    n, h, w, c = x_nhwc.shape
    s = stride
    ho = (h + 2 * pad - kh) // s + 1
    wo = (w + 2 * pad - kw) // s + 1
    xp = jnp.pad(x_nhwc, ((0, 0), (pad, pad), (pad, pad), (0, 0)))
    cols = []
    for di in range(kh):
        for dj in range(kw):
            cols.append(xp[:, di:di + (ho - 1) * s + 1:s,
                           dj:dj + (wo - 1) * s + 1:s, :])
    return jnp.concatenate(cols, axis=-1), ho, wo        # (n, ho, wo, kh*kw*c)


def _matmul_bias_act_kernel(x_ref, w_ref, b_ref, o_ref, *, act):
    """One output-row tile: bf16 MXU matmul, f32 bias + activation epilogue.
    No reshapes / strided slices inside the kernel."""
    acc = jnp.dot(x_ref[...], w_ref[...], preferred_element_type=jnp.float32)
    acc = acc + b_ref[...]
    if act == "relu":
        acc = jnp.maximum(acc, 0.0)
    elif act == "tanh":
        acc = jnp.tanh(acc)
    o_ref[...] = acc.astype(o_ref.dtype)


def conv_block(x_nhwc, w2, b2, *, stride, kh, kw, pad, act, out_dtype):
    """PyTorch nn.Conv2d (+activation) on NHWC data as ONE Pallas matmul kernel.

    JAX glue does zero-pad + real-K im2col (bf16); the kernel is a row-tiled
    matmul + bias + activation.  Because rows are tiled, only a (tm, K) slab is
    ever resident in VMEM (double-buffered), so the kernel also scales to large
    images on v7x's 64 MiB VMEM.
    """
    n, h, w, c = x_nhwc.shape
    patches, ho, wo = _im2col(x_nhwc, kh, kw, stride, pad)
    k_real = patches.shape[-1]
    kp, cout = w2.shape                     # K pre-padded to a 16-multiple (bf16 sublanes)
    m = n * ho * wo
    xm = patches.reshape(m, k_real)
    if kp != k_real:
        xm = jnp.pad(xm, ((0, 0), (0, kp - k_real)))
    xm = xm.astype(jnp.bfloat16)
    tm = _pick_tm(m)
    mp = _round_up(m, tm)
    if mp != m:
        xm = jnp.pad(xm, ((0, mp - m), (0, 0)))

    flops = 2 * mp * kp * cout
    bytes_acc = (xm.size * 2 + w2.size * 2 + cout * 4
                 + mp * cout * jnp.dtype(out_dtype).itemsize)

    out = pl.pallas_call(
        functools.partial(_matmul_bias_act_kernel, act=act),
        grid=(mp // tm,),
        in_specs=[
            pl.BlockSpec((tm, kp), lambda i: (i, 0)),
            pl.BlockSpec((kp, cout), lambda i: (0, 0)),
            pl.BlockSpec((1, cout), lambda i: (0, 0)),
        ],
        out_specs=pl.BlockSpec((tm, cout), lambda i: (i, 0)),
        out_shape=jax.ShapeDtypeStruct((mp, cout), out_dtype),
        compiler_params=pltpu.CompilerParams(
            dimension_semantics=("parallel",),
            vmem_limit_bytes=VMEM_LIMIT),
        cost_estimate=pl.CostEstimate(
            flops=flops,
            transcendentals=mp * cout if act == "tanh" else 0,
            bytes_accessed=bytes_acc),
    )(xm, w2, b2)
    return out[:m].reshape(n, ho, wo, cout)


# ---------------------- hoisted style-path kernel ---------------------------

def _style_kernel(s_ref, w1_ref, b1_ref, w2_ref, b2_ref, wmb_ref, o_ref):
    s1 = jnp.dot(s_ref[...], w1_ref[...],
                 preferred_element_type=jnp.float32) + b1_ref[...]
    s1 = jnp.maximum(s1, 0.0)                                       # Linear + ReLU
    s2 = jnp.dot(s1.astype(jnp.bfloat16), w2_ref[...],
                 preferred_element_type=jnp.float32) + b2_ref[...]  # Linear
    o_ref[...] = jnp.dot(s2.astype(jnp.bfloat16), wmb_ref[...],
                         preferred_element_type=jnp.float32)        # style half of mamba mix


def style_bias(params, style):
    """style_mlp(style)[0] pushed through the style half of the mamba mix,
    computed ONCE (hoisted out of the per-row-tile fused kernel)."""
    s8 = jnp.zeros((8, STYLE_IN), jnp.bfloat16).at[0].set(
        style[0].astype(jnp.bfloat16))        # pad M to 8 sublanes; rows 1..7 unused
    out = pl.pallas_call(
        _style_kernel,
        out_shape=jax.ShapeDtypeStruct((8, EMB_D), jnp.float32),
    )(s8, params["mlp_w1"], params["mlp_b1"], params["mlp_w2"], params["mlp_b2"],
      params["mamba_wb"])
    return out[0:1]                           # (1, EMB_D) style bias vector


# ----------------- fused mamba-standin + decoder 1x1 kernel -----------------

def _mamba_dec_kernel(x_ref, sv_ref, wm_ref, bm_ref, wd_ref, bd_ref, o_ref):
    """mamba stand-in (content 1x1 conv + broadcast style bias + tanh) followed
    by the decoder 1x1 conv, over one tile of patch-token rows."""
    h = jnp.tanh(jnp.dot(x_ref[...], wm_ref[...],
                         preferred_element_type=jnp.float32)
                 + sv_ref[...] + bm_ref[...])
    o_ref[...] = (jnp.dot(h.astype(jnp.bfloat16), wd_ref[...],
                          preferred_element_type=jnp.float32)
                  + bd_ref[...]).astype(o_ref.dtype)


def fused_mamba_decode(params, emb_nhwc, s_vec):
    n, hp, wp, d = emb_nhwc.shape
    m = n * hp * wp
    x = emb_nhwc.reshape(m, d)                # bf16 patch tokens
    tm = _pick_tm(m)
    mp = _round_up(m, tm)
    if mp != m:
        x = jnp.pad(x, ((0, mp - m), (0, 0)))

    flops = 2 * mp * d * (d + DEC_C)
    bytes_acc = x.size * 2 + (d * d + d * DEC_C) * 2 + mp * DEC_C * 4

    out = pl.pallas_call(
        _mamba_dec_kernel,
        grid=(mp // tm,),
        in_specs=[
            pl.BlockSpec((tm, d), lambda i: (i, 0)),
            pl.BlockSpec((1, d), lambda i: (0, 0)),       # hoisted style bias
            pl.BlockSpec((d, d), lambda i: (0, 0)),       # mamba content weight
            pl.BlockSpec((1, d), lambda i: (0, 0)),       # mamba bias
            pl.BlockSpec((d, DEC_C), lambda i: (0, 0)),   # decoder weight
            pl.BlockSpec((1, DEC_C), lambda i: (0, 0)),   # decoder bias
        ],
        out_specs=pl.BlockSpec((tm, DEC_C), lambda i: (i, 0)),
        out_shape=jax.ShapeDtypeStruct((mp, DEC_C), jnp.float32),
        compiler_params=pltpu.CompilerParams(
            dimension_semantics=("parallel",),
            vmem_limit_bytes=VMEM_LIMIT),
        cost_estimate=pl.CostEstimate(flops=flops, transcendentals=mp * d,
                                      bytes_accessed=bytes_acc),
    )(x, s_vec, params["mamba_wt"], params["mamba_b"],
      params["dec_w"], params["dec_b"])

    # drop padded rows, then pixel-shuffle back to image resolution (stay NHWC)
    y = out[:m].reshape(n, hp, wp, 3, PATCH, PATCH)
    return jnp.transpose(y, (0, 1, 4, 2, 5, 3)).reshape(n, hp * PATCH, wp * PATCH, 3)


# ------------------------------- MSE kernel --------------------------------

def _mse_kernel(a_ref, b_ref, o_ref, acc_ref, *, inv_n):
    i = pl.program_id(0)

    @pl.when(i == 0)
    def _():
        acc_ref[...] = jnp.zeros_like(acc_ref)

    d = a_ref[...].astype(jnp.float32) - b_ref[...].astype(jnp.float32)
    d2 = d * d
    tr = d2.shape[0]
    # lane-parallel (8,128) partials: plain VPU adds per step, no per-step
    # cross-lane/sublane XLU reduction.
    acc_ref[...] += jnp.sum(d2.reshape(tr // 8, 8, LANES), axis=0)

    @pl.when(i == pl.num_programs(0) - 1)
    def _():
        o_ref[...] = jnp.sum(acc_ref[...], keepdims=True) * inv_n


def mse_loss(a, b, real_count):
    """nn.MSELoss() (mean).  Both operands are padded identically with zeros, so
    padded positions contribute 0; only the divisor uses the true count."""
    af = a.reshape(-1).astype(jnp.float32)
    bf = b.reshape(-1).astype(jnp.float32)
    ln = af.shape[0]
    lp = _round_up(ln, 8 * LANES)             # lane-dense (rows, 128) layout
    af = jnp.pad(af, (0, lp - ln)).reshape(-1, LANES)
    bf = jnp.pad(bf, (0, lp - ln)).reshape(-1, LANES)
    rows = af.shape[0]
    tr = min(2048, rows)
    rp = _round_up(rows, tr)
    if rp != rows:
        af = jnp.pad(af, ((0, rp - rows), (0, 0)))
        bf = jnp.pad(bf, ((0, rp - rows), (0, 0)))
    out = pl.pallas_call(
        functools.partial(_mse_kernel, inv_n=1.0 / float(real_count)),
        grid=(rp // tr,),
        in_specs=[pl.BlockSpec((tr, LANES), lambda i: (i, 0)),
                  pl.BlockSpec((tr, LANES), lambda i: (i, 0))],
        out_specs=pl.BlockSpec((1, 1), lambda i: (0, 0)),
        out_shape=jax.ShapeDtypeStruct((1, 1), jnp.float32),
        scratch_shapes=[pltpu.VMEM((8, LANES), jnp.float32)],
        compiler_params=pltpu.CompilerParams(
            dimension_semantics=("arbitrary",),
            vmem_limit_bytes=VMEM_LIMIT),
    )(af, bf)
    return out[0, 0]


# ------------------------- parameter preparation ----------------------------

def prep_conv(w_oikk, bias):
    """(O, I, kh, kw) PyTorch conv weight -> (K, O) im2col matmul weight, bf16.
    K = kh*kw*cin (REAL channels), zero-padded only up to a multiple of 16 for
    bf16 sublane packing; the matching im2col columns are padded identically."""
    cout, cin, kh, kw = w_oikk.shape
    k = kh * kw * cin
    kp = _round_up(k, 16)
    w2 = jnp.transpose(w_oikk, (2, 3, 1, 0)).reshape(k, cout)
    if kp != k:
        w2 = jnp.pad(w2, ((0, kp - k), (0, 0)))
    return w2.astype(jnp.bfloat16), bias.reshape(1, cout).astype(jnp.float32)


def init_params(key):
    ks = jax.random.split(key, 9)

    def w(k, shape, scale=0.1):
        return jax.random.normal(k, shape, jnp.float32) * scale

    p = {}
    # frozen VGG-like encoder slices enc_1..enc_4 (3x3 conv + ReLU) and patch embedding
    enc_raw = {
        "e1": w(ks[0], (8, 3, 3, 3)),
        "e2": w(ks[1], (16, 8, 3, 3)),
        "e3": w(ks[2], (32, 16, 3, 3)),
        "e4": w(ks[3], (32, 32, 3, 3)),
        "pe": w(ks[4], (EMB_D, 3, PATCH, PATCH)),
    }
    for name, wt in enc_raw.items():
        w2, b2 = prep_conv(wt, jnp.zeros((wt.shape[0],), jnp.float32))
        p[name + "_w"], p[name + "_b"] = w2, b2

    mlp_w1 = w(ks[5], (STYLE_IN, 64))
    mlp_w2 = w(ks[6], (64, EMB_D))
    mamba_w = w(ks[7], (2 * EMB_D, EMB_D))
    dec_w = w(ks[8], (EMB_D, DEC_C))
    p.update({
        "mlp_w1": mlp_w1.astype(jnp.bfloat16),
        "mlp_b1": jnp.zeros((1, 64), jnp.float32),
        "mlp_w2": mlp_w2.astype(jnp.bfloat16),
        "mlp_b2": jnp.zeros((1, EMB_D), jnp.float32),
        "mamba_wt": mamba_w[:EMB_D].astype(jnp.bfloat16),   # content half of the mix
        "mamba_wb": mamba_w[EMB_D:].astype(jnp.bfloat16),   # style half of the mix
        "mamba_b": jnp.zeros((1, EMB_D), jnp.float32),
        "dec_w": dec_w.astype(jnp.bfloat16),
        "dec_b": jnp.zeros((1, DEC_C), jnp.float32),
    })
    return p


# ------------------------------- Net.forward -------------------------------

def encode_with_intermediate(params, x_nhwc):
    feats = []
    h = x_nhwc
    last = len(ENC_CFG) - 1
    for li, (name, _cout, stride) in enumerate(ENC_CFG):
        # intermediate activations stored in bf16; final features (loss operands) in f32
        out_dtype = jnp.float32 if li == last else jnp.bfloat16
        h = conv_block(h, params[name + "_w"], params[name + "_b"],
                       stride=stride, kh=3, kw=3, pad=1, act="relu",
                       out_dtype=out_dtype)
        feats.append(h)
    return feats


@jax.jit
def net_forward(params, content, style):
    # single NCHW -> NHWC transpose at the module boundary; channels stay REAL (3)
    x = jnp.transpose(content, (0, 2, 3, 1))

    # ct = self.encode_with_intermediate(content)
    ct = encode_with_intermediate(params, x)

    # content = self.patch_emb(content)
    emb = conv_block(x, params["pe_w"], params["pe_b"],
                     stride=PATCH, kh=PATCH, kw=PATCH, pad=0, act="none",
                     out_dtype=jnp.bfloat16)

    # style = self.style_mlp(style); style_cls broadcast (the torch repeat/squeeze
    # lines are no-ops for a (1, D) style batch).  Computed ONCE (hoisted).
    s_vec = style_bias(params, style)

    # hs = self.mamba(style_cls.float(), None, content, None, None); g_t = decode(hs)
    g_nhwc = fused_mamba_decode(params, emb, s_vec)

    # g_t_feats = self.encode_with_intermediate(g_t)
    g_t_feats = encode_with_intermediate(params, g_nhwc)

    # loss_c = self.calc_content_loss(g_t_feats[-1], ct[-1])
    # TODO(synk): at larger scale this reduction would be fused into the last
    #             conv of the second encode to skip one feature HBM round trip.
    f = ct[-1]
    loss_c = mse_loss(g_t_feats[-1], f, f.size)

    g_t = jnp.transpose(g_nhwc, (0, 3, 1, 2))   # NCHW for the return value
    return loss_c, g_t


# ----------------------------------- main -----------------------------------

if __name__ == "__main__":
    key = jax.random.PRNGKey(0)
    kparam, kcontent, kstyle = jax.random.split(key, 3)
    params = init_params(kparam)

    content = jax.random.normal(kcontent, (2, 3, 16, 16), jnp.float32)   # NCHW image
    style = jax.random.normal(kstyle, (1, STYLE_IN), jnp.float32)        # style feature

    loss_c, g_t = net_forward(params, content, style)
    jax.block_until_ready((loss_c, g_t))

    assert g_t.shape == (2, 3, 16, 16)
    assert loss_c.shape == ()
    assert bool(jnp.isfinite(loss_c)) and bool(jnp.all(jnp.isfinite(g_t)))
    print("KERNEL_OK")
</pallas_src>

<mosaic_0001>
module attributes {stable_mosaic.version = 11 : i64} {
  func.func @_matmul_bias_act_kernel(%arg0: i32, %arg1: memref<256x32xbf16, #tpu.memory_space<vmem>>, %arg2: memref<32x8xbf16, #tpu.memory_space<vmem>>, %arg3: memref<1x8xf32, #tpu.memory_space<vmem>>, %arg4: memref<256x8xbf16, #tpu.memory_space<vmem>>) attributes {dimension_semantics = [#tpu.dimension_semantics<parallel>], iteration_bounds = array<i64: 2>, scalar_prefetch = 0 : i64, scratch_operands = 0 : i64, tpu.core_type = #tpu.core_type<tc>, window_params = [{transform_indices = @transform_0, window_bounds = array<i64: 256, 32>}, {pipeline_mode = #tpu.pipeline_mode<synchronous>, transform_indices = @transform_1, window_bounds = array<i64: 32, 8>}, {pipeline_mode = #tpu.pipeline_mode<synchronous>, transform_indices = @transform_2, window_bounds = array<i64: 1, 8>}, {transform_indices = @transform_3, window_bounds = array<i64: 256, 8>}]} {
    %c0 = arith.constant 0 : index
    %c0_0 = arith.constant 0 : index
    %0 = vector.load %arg1[%c0, %c0_0] : memref<256x32xbf16, #tpu.memory_space<vmem>>, vector<256x32xbf16>
    %c0_1 = arith.constant 0 : index
    %c0_2 = arith.constant 0 : index
    %1 = vector.load %arg2[%c0_1, %c0_2] : memref<32x8xbf16, #tpu.memory_space<vmem>>, vector<32x8xbf16>
    %cst = arith.constant dense<0.000000e+00> : vector<256x8xf32>
    %2 = tpu.matmul %0, %1, %cst {dimension_numbers = #tpu.dot_dimension_numbers<[1], [0], [0], [1], [0, 0, 1, 1], [], []>} : vector<256x32xbf16>, vector<32x8xbf16>, vector<256x8xf32> -> vector<256x8xf32>
    %c0_3 = arith.constant 0 : index
    %c0_4 = arith.constant 0 : index
    %3 = vector.load %arg3[%c0_3, %c0_4] : memref<1x8xf32, #tpu.memory_space<vmem>>, vector<1x8xf32>
    %4 = vector.broadcast %3 : vector<1x8xf32> to vector<256x8xf32>
    %5 = arith.addf %2, %4 : vector<256x8xf32>
    %cst_5 = arith.constant 0.000000e+00 : f32
    %6 = vector.broadcast %cst_5 : f32 to vector<256x8xf32>
    %7 = arith.maximumf %5, %6 : vector<256x8xf32>
    %8 = arith.truncf %7 : vector<256x8xf32> to vector<256x8xbf16>
    %c0_6 = arith.constant 0 : index
    %c0_7 = arith.constant 0 : index
    %9 = vector.load %arg4[%c0_6, %c0_7] : memref<256x8xbf16, #tpu.memory_space<vmem>>, vector<256x8xbf16>
    tpu.vector_store %arg4[%c0_6, %c0_7], %8 {strides = array<i32>} : memref<256x8xbf16, #tpu.memory_space<vmem>>, vector<256x8xbf16>,
    return
  }
  func.func @transform_0(%arg0: i32) -> (i32, i32) {
    %c0_i32 = arith.constant 0 : i32
    %c0_i32_0 = arith.constant 0 : i32
    return %arg0, %c0_i32 : i32, i32
  }
  func.func @transform_1(%arg0: i32) -> (i32, i32) {
    %c0_i32 = arith.constant 0 : i32
    %c0_i32_0 = arith.constant 0 : i32
    %c0_i32_1 = arith.constant 0 : i32
    return %c0_i32, %c0_i32_0 : i32, i32
  }
  func.func @transform_2(%arg0: i32) -> (i32, i32) {
    %c0_i32 = arith.constant 0 : i32
    %c0_i32_0 = arith.constant 0 : i32
    %c0_i32_1 = arith.constant 0 : i32
    return %c0_i32, %c0_i32_0 : i32, i32
  }
  func.func @transform_3(%arg0: i32) -> (i32, i32) {
    %c0_i32 = arith.constant 0 : i32
    %c0_i32_0 = arith.constant 0 : i32
    return %arg0, %c0_i32 : i32, i32
  }
}

module attributes {stable_mosaic.version = 11 : i64} {
  func.func @_matmul_bias_act_kernel(%arg0: i32, %arg1: memref<64x80xbf16, #tpu.memory_space<vmem>>, %arg2: memref<80x16xbf16, #tpu.memory_space<vmem>>, %arg3: memref<1x16xf32, #tpu.memory_space<vmem>>, %arg4: memref<64x16xbf16, #tpu.memory_space<vmem>>) attributes {dimension_semantics = [#tpu.dimension_semantics<parallel>], iteration_bounds = array<i64: 2>, scalar_prefetch = 0 : i64, scratch_operands = 0 : i64, tpu.core_type = #tpu.core_type<tc>, window_params = [{transform_indices = @transform_0, window_bounds = array<i64: 64, 80>}, {pipeline_mode = #tpu.pipeline_mode<synchronous>, transform_indices = @transform_1, window_bounds = array<i64: 80, 16>}, {pipeline_mode = #tpu.pipeline_mode<synchronous>, transform_indices = @transform_2, window_bounds = array<i64: 1, 16>}, {transform_indices = @transform_3, window_bounds = array<i64: 64, 16>}]} {
    %c0 = arith.constant 0 : index
    %c0_0 = arith.constant 0 : index
    %0 = vector.load %arg1[%c0, %c0_0] : memref<64x80xbf16, #tpu.memory_space<vmem>>, vector<64x80xbf16>
    %c0_1 = arith.constant 0 : index
    %c0_2 = arith.constant 0 : index
    %1 = vector.load %arg2[%c0_1, %c0_2] : memref<80x16xbf16, #tpu.memory_space<vmem>>, vector<80x16xbf16>
    %cst = arith.constant dense<0.000000e+00> : vector<64x16xf32>
    %2 = tpu.matmul %0, %1, %cst {dimension_numbers = #tpu.dot_dimension_numbers<[1], [0], [0], [1], [0, 0, 1, 1], [], []>} : vector<64x80xbf16>, vector<80x16xbf16>, vector<64x16xf32> -> vector<64x16xf32>
    %c0_3 = arith.constant 0 : index
    %c0_4 = arith.constant 0 : index
    %3 = vector.load %arg3[%c0_3, %c0_4] : memref<1x16xf32, #tpu.memory_space<vmem>>, vector<1x16xf32>
    %4 = vector.broadcast %3 : vector<1x16xf32> to vector<64x16xf32>
    %5 = arith.addf %2, %4 : vector<64x16xf32>
    %cst_5 = arith.constant 0.000000e+00 : f32
    %6 = vector.broadcast %cst_5 : f32 to vector<64x16xf32>
    %7 = arith.maximumf %5, %6 : vector<64x16xf32>
    %8 = arith.truncf %7 : vector<64x16xf32> to vector<64x16xbf16>
    %c0_6 = arith.constant 0 : index
    %c0_7 = arith.constant 0 : index
    %9 = vector.load %arg4[%c0_6, %c0_7] : memref<64x16xbf16, #tpu.memory_space<vmem>>, vector<64x16xbf16>
    tpu.vector_store %arg4[%c0_6, %c0_7], %8 {strides = array<i32>} : memref<64x16xbf16, #tpu.memory_space<vmem>>, vector<64x16xbf16>,
    return
  }
  func.func @transform_0(%arg0: i32) -> (i32, i32) {
    %c0_i32 = arith.constant 0 : i32
    %c0_i32_0 = arith.constant 0 : i32
    return %arg0, %c0_i32 : i32, i32
  }
  func.func @transform_1(%arg0: i32) -> (i32, i32) {
    %c0_i32 = arith.constant 0 : i32
    %c0_i32_0 = arith.constant 0 : i32
    %c0_i32_1 = arith.constant 0 : i32
    return %c0_i32, %c0_i32_0 : i32, i32
  }
  func.func @transform_2(%arg0: i32) -> (i32, i32) {
    %c0_i32 = arith.constant 0 : i32
    %c0_i32_0 = arith.constant 0 : i32
    %c0_i32_1 = arith.constant 0 : i32
    return %c0_i32, %c0_i32_0 : i32, i32
  }
  func.func @transform_3(%arg0: i32) -> (i32, i32) {
    %c0_i32 = arith.constant 0 : i32
    %c0_i32_0 = arith.constant 0 : i32
    return %arg0, %c0_i32 : i32, i32
  }
}

module attributes {stable_mosaic.version = 11 : i64} {
  func.func @_matmul_bias_act_kernel(%arg0: i32, %arg1: memref<16x144xbf16, #tpu.memory_space<vmem>>, %arg2: memref<144x32xbf16, #tpu.memory_space<vmem>>, %arg3: memref<1x32xf32, #tpu.memory_space<vmem>>, %arg4: memref<16x32xbf16, #tpu.memory_space<vmem>>) attributes {dimension_semantics = [#tpu.dimension_semantics<parallel>], iteration_bounds = array<i64: 2>, scalar_prefetch = 0 : i64, scratch_operands = 0 : i64, tpu.core_type = #tpu.core_type<tc>, window_params = [{transform_indices = @transform_0, window_bounds = array<i64: 16, 144>}, {pipeline_mode = #tpu.pipeline_mode<synchronous>, transform_indices = @transform_1, window_bounds = array<i64: 144, 32>}, {pipeline_mode = #tpu.pipeline_mode<synchronous>, transform_indices = @transform_2, window_bounds = array<i64: 1, 32>}, {transform_indices = @transform_3, window_bounds = array<i64: 16, 32>}]} {
    %c0 = arith.constant 0 : index
    %c0_0 = arith.constant 0 : index
    %0 = vector.load %arg1[%c0, %c0_0] : memref<16x144xbf16, #tpu.memory_space<vmem>>, vector<16x144xbf16>
    %c0_1 = arith.constant 0 : index
    %c0_2 = arith.constant 0 : index
    %1 = vector.load %arg2[%c0_1, %c0_2] : memref<144x32xbf16, #tpu.memory_space<vmem>>, vector<144x32xbf16>
    %cst = arith.constant dense<0.000000e+00> : vector<16x32xf32>
    %2 = tpu.matmul %0, %1, %cst {dimension_numbers = #tpu.dot_dimension_numbers<[1], [0], [0], [1], [0, 0, 1, 1], [], []>} : vector<16x144xbf16>, vector<144x32xbf16>, vector<16x32xf32> -> vector<16x32xf32>
    %c0_3 = arith.constant 0 : index
    %c0_4 = arith.constant 0 : index
    %3 = vector.load %arg3[%c0_3, %c0_4] : memref<1x32xf32, #tpu.memory_space<vmem>>, vector<1x32xf32>
    %4 = vector.broadcast %3 : vector<1x32xf32> to vector<16x32xf32>
    %5 = arith.addf %2, %4 : vector<16x32xf32>
    %cst_5 = arith.constant 0.000000e+00 : f32
    %6 = vector.broadcast %cst_5 : f32 to vector<16x32xf32>
    %7 = arith.maximumf %5, %6 : vector<16x32xf32>
    %8 = arith.truncf %7 : vector<16x32xf32> to vector<16x32xbf16>
    %c0_6 = arith.constant 0 : index
    %c0_7 = arith.constant 0 : index
    %9 = vector.load %arg4[%c0_6, %c0_7] : memref<16x32xbf16, #tpu.memory_space<vmem>>, vector<16x32xbf16>
    tpu.vector_store %arg4[%c0_6, %c0_7], %8 {strides = array<i32>} : memref<16x32xbf16, #tpu.memory_space<vmem>>, vector<16x32xbf16>,
    return
  }
  func.func @transform_0(%arg0: i32) -> (i32, i32) {
    %c0_i32 = arith.constant 0 : i32
    %c0_i32_0 = arith.constant 0 : i32
    return %arg0, %c0_i32 : i32, i32
  }
  func.func @transform_1(%arg0: i32) -> (i32, i32) {
    %c0_i32 = arith.constant 0 : i32
    %c0_i32_0 = arith.constant 0 : i32
    %c0_i32_1 = arith.constant 0 : i32
    return %c0_i32, %c0_i32_0 : i32, i32
  }
  func.func @transform_2(%arg0: i32) -> (i32, i32) {
    %c0_i32 = arith.constant 0 : i32
    %c0_i32_0 = arith.constant 0 : i32
    %c0_i32_1 = arith.constant 0 : i32
    return %c0_i32, %c0_i32_0 : i32, i32
  }
  func.func @transform_3(%arg0: i32) -> (i32, i32) {
    %c0_i32 = arith.constant 0 : i32
    %c0_i32_0 = arith.constant 0 : i32
    return %arg0, %c0_i32 : i32, i32
  }
}

module attributes {stable_mosaic.version = 11 : i64} {
  func.func @_matmul_bias_act_kernel(%arg0: i32, %arg1: memref<8x288xbf16, #tpu.memory_space<vmem>>, %arg2: memref<288x32xbf16, #tpu.memory_space<vmem>>, %arg3: memref<1x32xf32, #tpu.memory_space<vmem>>, %arg4: memref<8x32xf32, #tpu.memory_space<vmem>>) attributes {dimension_semantics = [#tpu.dimension_semantics<parallel>], iteration_bounds = array<i64: 1>, scalar_prefetch = 0 : i64, scratch_operands = 0 : i64, tpu.core_type = #tpu.core_type<tc>, window_params = [{transform_indices = @transform_0, window_bounds = array<i64: 8, 288>}, {pipeline_mode = #tpu.pipeline_mode<synchronous>, transform_indices = @transform_1, window_bounds = array<i64: 288, 32>}, {pipeline_mode = #tpu.pipeline_mode<synchronous>, transform_indices = @transform_2, window_bounds = array<i64: 1, 32>}, {transform_indices = @transform_3, window_bounds = array<i64: 8, 32>}]} {
    %c0 = arith.constant 0 : index
    %c0_0 = arith.constant 0 : index
    %0 = vector.load %arg1[%c0, %c0_0] : memref<8x288xbf16, #tpu.memory_space<vmem>>, vector<8x288xbf16>
    %c0_1 = arith.constant 0 : index
    %c0_2 = arith.constant 0 : index
    %1 = vector.load %arg2[%c0_1, %c0_2] : memref<288x32xbf16, #tpu.memory_space<vmem>>, vector<288x32xbf16>
    %cst = arith.constant dense<0.000000e+00> : vector<8x32xf32>
    %2 = tpu.matmul %0, %1, %cst {dimension_numbers = #tpu.dot_dimension_numbers<[1], [0], [0], [1], [0, 0, 1, 1], [], []>} : vector<8x288xbf16>, vector<288x32xbf16>, vector<8x32xf32> -> vector<8x32xf32>
    %c0_3 = arith.constant 0 : index
    %c0_4 = arith.constant 0 : index
    %3 = vector.load %arg3[%c0_3, %c0_4] : memref<1x32xf32, #tpu.memory_space<vmem>>, vector<1x32xf32>
    %4 = vector.broadcast %3 : vector<1x32xf32> to vector<8x32xf32>
    %5 = arith.addf %2, %4 : vector<8x32xf32>
    %cst_5 = arith.constant 0.000000e+00 : f32
    %6 = vector.broadcast %cst_5 : f32 to vector<8x32xf32>
    %7 = arith.maximumf %5, %6 : vector<8x32xf32>
    %c0_6 = arith.constant 0 : index
    %c0_7 = arith.constant 0 : index
    %8 = vector.load %arg4[%c0_6, %c0_7] : memref<8x32xf32, #tpu.memory_space<vmem>>, vector<8x32xf32>
    tpu.vector_store %arg4[%c0_6, %c0_7], %7 {strides = array<i32>} : memref<8x32xf32, #tpu.memory_space<vmem>>, vector<8x32xf32>,
    return
  }
  func.func @transform_0(%arg0: i32) -> (i32, i32) {
    %c0_i32 = arith.constant 0 : i32
    %c0_i32_0 = arith.constant 0 : i32
    return %arg0, %c0_i32 : i32, i32
  }
  func.func @transform_1(%arg0: i32) -> (i32, i32) {
    %c0_i32 = arith.constant 0 : i32
    %c0_i32_0 = arith.constant 0 : i32
    %c0_i32_1 = arith.constant 0 : i32
    return %c0_i32, %c0_i32_0 : i32, i32
  }
  func.func @transform_2(%arg0: i32) -> (i32, i32) {
    %c0_i32 = arith.constant 0 : i32
    %c0_i32_0 = arith.constant 0 : i32
    %c0_i32_1 = arith.constant 0 : i32
    return %c0_i32, %c0_i32_0 : i32, i32
  }
  func.func @transform_3(%arg0: i32) -> (i32, i32) {
    %c0_i32 = arith.constant 0 : i32
    %c0_i32_0 = arith.constant 0 : i32
    return %arg0, %c0_i32 : i32, i32
  }
}

module attributes {stable_mosaic.version = 11 : i64} {
  func.func @_matmul_bias_act_kernel(%arg0: i32, %arg1: memref<16x48xbf16, #tpu.memory_space<vmem>>, %arg2: memref<48x32xbf16, #tpu.memory_space<vmem>>, %arg3: memref<1x32xf32, #tpu.memory_space<vmem>>, %arg4: memref<16x32xbf16, #tpu.memory_space<vmem>>) attributes {dimension_semantics = [#tpu.dimension_semantics<parallel>], iteration_bounds = array<i64: 2>, scalar_prefetch = 0 : i64, scratch_operands = 0 : i64, tpu.core_type = #tpu.core_type<tc>, window_params = [{transform_indices = @transform_0, window_bounds = array<i64: 16, 48>}, {pipeline_mode = #tpu.pipeline_mode<synchronous>, transform_indices = @transform_1, window_bounds = array<i64: 48, 32>}, {pipeline_mode = #tpu.pipeline_mode<synchronous>, transform_indices = @transform_2, window_bounds = array<i64: 1, 32>}, {transform_indices = @transform_3, window_bounds = array<i64: 16, 32>}]} {
    %c0 = arith.constant 0 : index
    %c0_0 = arith.constant 0 : index
    %0 = vector.load %arg1[%c0, %c0_0] : memref<16x48xbf16, #tpu.memory_space<vmem>>, vector<16x48xbf16>
    %c0_1 = arith.constant 0 : index
    %c0_2 = arith.constant 0 : index
    %1 = vector.load %arg2[%c0_1, %c0_2] : memref<48x32xbf16, #tpu.memory_space<vmem>>, vector<48x32xbf16>
    %cst = arith.constant dense<0.000000e+00> : vector<16x32xf32>
    %2 = tpu.matmul %0, %1, %cst {dimension_numbers = #tpu.dot_dimension_numbers<[1], [0], [0], [1], [0, 0, 1, 1], [], []>} : vector<16x48xbf16>, vector<48x32xbf16>, vector<16x32xf32> -> vector<16x32xf32>
    %c0_3 = arith.constant 0 : index
    %c0_4 = arith.constant 0 : index
    %3 = vector.load %arg3[%c0_3, %c0_4] : memref<1x32xf32, #tpu.memory_space<vmem>>, vector<1x32xf32>
    %4 = vector.broadcast %3 : vector<1x32xf32> to vector<16x32xf32>
    %5 = arith.addf %2, %4 : vector<16x32xf32>
    %6 = arith.truncf %5 : vector<16x32xf32> to vector<16x32xbf16>
    %c0_5 = arith.constant 0 : index
    %c0_6 = arith.constant 0 : index
    %7 = vector.load %arg4[%c0_5, %c0_6] : memref<16x32xbf16, #tpu.memory_space<vmem>>, vector<16x32xbf16>
    tpu.vector_store %arg4[%c0_5, %c0_6], %6 {strides = array<i32>} : memref<16x32xbf16, #tpu.memory_space<vmem>>, vector<16x32xbf16>,
    return
  }
  func.func @transform_0(%arg0: i32) -> (i32, i32) {
    %c0_i32 = arith.constant 0 : i32
    %c0_i32_0 = arith.constant 0 : i32
    return %arg0, %c0_i32 : i32, i32
  }
  func.func @transform_1(%arg0: i32) -> (i32, i32) {
    %c0_i32 = arith.constant 0 : i32
    %c0_i32_0 = arith.constant 0 : i32
    %c0_i32_1 = arith.constant 0 : i32
    return %c0_i32, %c0_i32_0 : i32, i32
  }
  func.func @transform_2(%arg0: i32) -> (i32, i32) {
    %c0_i32 = arith.constant 0 : i32
    %c0_i32_0 = arith.constant 0 : i32
    %c0_i32_1 = arith.constant 0 : i32
    return %c0_i32, %c0_i32_0 : i32, i32
  }
  func.func @transform_3(%arg0: i32) -> (i32, i32) {
    %c0_i32 = arith.constant 0 : i32
    %c0_i32_0 = arith.constant 0 : i32
    return %arg0, %c0_i32 : i32, i32
  }
}

module attributes {stable_mosaic.version = 11 : i64} {
  func.func @_style_kernel(%arg0: memref<8x32xbf16, #tpu.memory_space<vmem>>, %arg1: memref<32x64xbf16, #tpu.memory_space<vmem>>, %arg2: memref<1x64xf32, #tpu.memory_space<vmem>>, %arg3: memref<64x32xbf16, #tpu.memory_space<vmem>>, %arg4: memref<1x32xf32, #tpu.memory_space<vmem>>, %arg5: memref<32x32xbf16, #tpu.memory_space<vmem>>, %arg6: memref<8x32xf32, #tpu.memory_space<vmem>>) attributes {dimension_semantics = [], scalar_prefetch = 0 : i64, scratch_operands = 0 : i64, tpu.core_type = #tpu.core_type<tc>} {
    %c0 = arith.constant 0 : index
    %c0_0 = arith.constant 0 : index
    %0 = vector.load %arg0[%c0, %c0_0] : memref<8x32xbf16, #tpu.memory_space<vmem>>, vector<8x32xbf16>
    %c0_1 = arith.constant 0 : index
    %c0_2 = arith.constant 0 : index
    %1 = vector.load %arg1[%c0_1, %c0_2] : memref<32x64xbf16, #tpu.memory_space<vmem>>, vector<32x64xbf16>
    %cst = arith.constant dense<0.000000e+00> : vector<8x64xf32>
    %2 = tpu.matmul %0, %1, %cst {dimension_numbers = #tpu.dot_dimension_numbers<[1], [0], [0], [1], [0, 0, 1, 1], [], []>} : vector<8x32xbf16>, vector<32x64xbf16>, vector<8x64xf32> -> vector<8x64xf32>
    %c0_3 = arith.constant 0 : index
    %c0_4 = arith.constant 0 : index
    %3 = vector.load %arg2[%c0_3, %c0_4] : memref<1x64xf32, #tpu.memory_space<vmem>>, vector<1x64xf32>
    %4 = vector.broadcast %3 : vector<1x64xf32> to vector<8x64xf32>
    %5 = arith.addf %2, %4 : vector<8x64xf32>
    %cst_5 = arith.constant 0.000000e+00 : f32
    %6 = vector.broadcast %cst_5 : f32 to vector<8x64xf32>
    %7 = arith.maximumf %5, %6 : vector<8x64xf32>
    %8 = arith.truncf %7 : vector<8x64xf32> to vector<8x64xbf16>
    %c0_6 = arith.constant 0 : index
    %c0_7 = arith.constant 0 : index
    %9 = vector.load %arg3[%c0_6, %c0_7] : memref<64x32xbf16, #tpu.memory_space<vmem>>, vector<64x32xbf16>
    %cst_8 = arith.constant dense<0.000000e+00> : vector<8x32xf32>
    %10 = tpu.matmul %8, %9, %cst_8 {dimension_numbers = #tpu.dot_dimension_numbers<[1], [0], [0], [1], [0, 0, 1, 1], [], []>} : vector<8x64xbf16>, vector<64x32xbf16>, vector<8x32xf32> -> vector<8x32xf32>
    %c0_9 = arith.constant 0 : index
    %c0_10 = arith.constant 0 : index
    %11 = vector.load %arg4[%c0_9, %c0_10] : memref<1x32xf32, #tpu.memory_space<vmem>>, vector<1x32xf32>
    %12 = vector.broadcast %11 : vector<1x32xf32> to vector<8x32xf32>
    %13 = arith.addf %10, %12 : vector<8x32xf32>
    %14 = arith.truncf %13 : vector<8x32xf32> to vector<8x32xbf16>
    %c0_11 = arith.constant 0 : index
    %c0_12 = arith.constant 0 : index
    %15 = vector.load %arg5[%c0_11, %c0_12] : memref<32x32xbf16, #tpu.memory_space<vmem>>, vector<32x32xbf16>
    %cst_13 = arith.constant dense<0.000000e+00> : vector<8x32xf32>
    %16 = tpu.matmul %14, %15, %cst_13 {dimension_numbers = #tpu.dot_dimension_numbers<[1], [0], [0], [1], [0, 0, 1, 1], [], []>} : vector<8x32xbf16>, vector<32x32xbf16>, vector<8x32xf32> -> vector<8x32xf32>
    %c0_14 = arith.constant 0 : index
    %c0_15 = arith.constant 0 : index
    %17 = vector.load %arg6[%c0_14, %c0_15] : memref<8x32xf32, #tpu.memory_space<vmem>>, vector<8x32xf32>
    tpu.vector_store %arg6[%c0_14, %c0_15], %16 {strides = array<i32>} : memref<8x32xf32, #tpu.memory_space<vmem>>, vector<8x32xf32>,
    return
  }
}

module attributes {stable_mosaic.version = 11 : i64} {
  func.func @_mamba_dec_kernel(%arg0: i32, %arg1: memref<16x32xbf16, #tpu.memory_space<vmem>>, %arg2: memref<1x32xf32, #tpu.memory_space<vmem>>, %arg3: memref<32x32xbf16, #tpu.memory_space<vmem>>, %arg4: memref<1x32xf32, #tpu.memory_space<vmem>>, %arg5: memref<32x48xbf16, #tpu.memory_space<vmem>>, %arg6: memref<1x48xf32, #tpu.memory_space<vmem>>, %arg7: memref<16x48xf32, #tpu.memory_space<vmem>>) attributes {dimension_semantics = [#tpu.dimension_semantics<parallel>], iteration_bounds = array<i64: 2>, scalar_prefetch = 0 : i64, scratch_operands = 0 : i64, tpu.core_type = #tpu.core_type<tc>, window_params = [{transform_indices = @transform_0, window_bounds = array<i64: 16, 32>}, {pipeline_mode = #tpu.pipeline_mode<synchronous>, transform_indices = @transform_1, window_bounds = array<i64: 1, 32>}, {pipeline_mode = #tpu.pipeline_mode<synchronous>, transform_indices = @transform_2, window_bounds = array<i64: 32, 32>}, {pipeline_mode = #tpu.pipeline_mode<synchronous>, transform_indices = @transform_3, window_bounds = array<i64: 1, 32>}, {pipeline_mode = #tpu.pipeline_mode<synchronous>, transform_indices = @transform_4, window_bounds = array<i64: 32, 48>}, {pipeline_mode = #tpu.pipeline_mode<synchronous>, transform_indices = @transform_5, window_bounds = array<i64: 1, 48>}, {transform_indices = @transform_6, window_bounds = array<i64: 16, 48>}]} {
    %c0 = arith.constant 0 : index
    %c0_0 = arith.constant 0 : index
    %0 = vector.load %arg1[%c0, %c0_0] : memref<16x32xbf16, #tpu.memory_space<vmem>>, vector<16x32xbf16>
    %c0_1 = arith.constant 0 : index
    %c0_2 = arith.constant 0 : index
    %1 = vector.load %arg3[%c0_1, %c0_2] : memref<32x32xbf16, #tpu.memory_space<vmem>>, vector<32x32xbf16>
    %cst = arith.constant dense<0.000000e+00> : vector<16x32xf32>
    %2 = tpu.matmul %0, %1, %cst {dimension_numbers = #tpu.dot_dimension_numbers<[1], [0], [0], [1], [0, 0, 1, 1], [], []>} : vector<16x32xbf16>, vector<32x32xbf16>, vector<16x32xf32> -> vector<16x32xf32>
    %c0_3 = arith.constant 0 : index
    %c0_4 = arith.constant 0 : index
    %3 = vector.load %arg2[%c0_3, %c0_4] : memref<1x32xf32, #tpu.memory_space<vmem>>, vector<1x32xf32>
    %4 = vector.broadcast %3 : vector<1x32xf32> to vector<16x32xf32>
    %5 = arith.addf %2, %4 : vector<16x32xf32>
    %c0_5 = arith.constant 0 : index
    %c0_6 = arith.constant 0 : index
    %6 = vector.load %arg4[%c0_5, %c0_6] : memref<1x32xf32, #tpu.memory_space<vmem>>, vector<1x32xf32>
    %7 = vector.broadcast %6 : vector<1x32xf32> to vector<16x32xf32>
    %8 = arith.addf %5, %7 : vector<16x32xf32>
    %9 = math.tanh %8 : vector<16x32xf32>
    %10 = arith.truncf %9 : vector<16x32xf32> to vector<16x32xbf16>
    %c0_7 = arith.constant 0 : index
    %c0_8 = arith.constant 0 : index
    %11 = vector.load %arg5[%c0_7, %c0_8] : memref<32x48xbf16, #tpu.memory_space<vmem>>, vector<32x48xbf16>
    %cst_9 = arith.constant dense<0.000000e+00> : vector<16x48xf32>
    %12 = tpu.matmul %10, %11, %cst_9 {dimension_numbers = #tpu.dot_dimension_numbers<[1], [0], [0], [1], [0, 0, 1, 1], [], []>} : vector<16x32xbf16>, vector<32x48xbf16>, vector<16x48xf32> -> vector<16x48xf32>
    %c0_10 = arith.constant 0 : index
    %c0_11 = arith.constant 0 : index
    %13 = vector.load %arg6[%c0_10, %c0_11] : memref<1x48xf32, #tpu.memory_space<vmem>>, vector<1x48xf32>
    %14 = vector.broadcast %13 : vector<1x48xf32> to vector<16x48xf32>
    %15 = arith.addf %12, %14 : vector<16x48xf32>
    %c0_12 = arith.constant 0 : index
    %c0_13 = arith.constant 0 : index
    %16 = vector.load %arg7[%c0_12, %c0_13] : memref<16x48xf32, #tpu.memory_space<vmem>>, vector<16x48xf32>
    tpu.vector_store %arg7[%c0_12, %c0_13], %15 {strides = array<i32>} : memref<16x48xf32, #tpu.memory_space<vmem>>, vector<16x48xf32>,
    return
  }
  func.func @transform_0(%arg0: i32) -> (i32, i32) {
    %c0_i32 = arith.constant 0 : i32
    %c0_i32_0 = arith.constant 0 : i32
    return %arg0, %c0_i32 : i32, i32
  }
  func.func @transform_1(%arg0: i32) -> (i32, i32) {
    %c0_i32 = arith.constant 0 : i32
    %c0_i32_0 = arith.constant 0 : i32
    %c0_i32_1 = arith.constant 0 : i32
    return %c0_i32, %c0_i32_0 : i32, i32
  }
  func.func @transform_2(%arg0: i32) -> (i32, i32) {
    %c0_i32 = arith.constant 0 : i32
    %c0_i32_0 = arith.constant 0 : i32
    %c0_i32_1 = arith.constant 0 : i32
    return %c0_i32, %c0_i32_0 : i32, i32
  }
  func.func @transform_3(%arg0: i32) -> (i32, i32) {
    %c0_i32 = arith.constant 0 : i32
    %c0_i32_0 = arith.constant 0 : i32
    %c0_i32_1 = arith.constant 0 : i32
    return %c0_i32, %c0_i32_0 : i32, i32
  }
  func.func @transform_4(%arg0: i32) -> (i32, i32) {
    %c0_i32 = arith.constant 0 : i32
    %c0_i32_0 = arith.constant 0 : i32
    %c0_i32_1 = arith.constant 0 : i32
    return %c0_i32, %c0_i32_0 : i32, i32
  }
  func.func @transform_5(%arg0: i32) -> (i32, i32) {
    %c0_i32 = arith.constant 0 : i32
    %c0_i32_0 = arith.constant 0 : i32
    %c0_i32_1 = arith.constant 0 : i32
    return %c0_i32, %c0_i32_0 : i32, i32
  }
  func.func @transform_6(%arg0: i32) -> (i32, i32) {
    %c0_i32 = arith.constant 0 : i32
    %c0_i32_0 = arith.constant 0 : i32
    return %arg0, %c0_i32 : i32, i32
  }
}

module attributes {stable_mosaic.version = 11 : i64} {
  func.func @_mse_kernel(%arg0: i32, %arg1: memref<8x128xf32, #tpu.memory_space<vmem>>, %arg2: memref<8x128xf32, #tpu.memory_space<vmem>>, %arg3: memref<1x1xf32, #tpu.memory_space<vmem>>, %arg4: memref<8x128xf32, #tpu.memory_space<vmem>>) attributes {dimension_semantics = [#tpu.dimension_semantics<arbitrary>], iteration_bounds = array<i64: 1>, scalar_prefetch = 0 : i64, scratch_operands = 1 : i64, tpu.core_type = #tpu.core_type<tc>, window_params = [{transform_indices = @transform_0, window_bounds = array<i64: 8, 128>}, {transform_indices = @transform_1, window_bounds = array<i64: 8, 128>}, {pipeline_mode = #tpu.pipeline_mode<synchronous>, transform_indices = @transform_2, window_bounds = array<i64: 1, 1>}]} {
    %c0_i32 = arith.constant 0 : i32
    %0 = arith.cmpi eq, %arg0, %c0_i32 : i32
    %1 = arith.extui %0 : i1 to i32
    %c0_i32_0 = arith.constant 0 : i32
    %2 = arith.cmpi ne, %1, %c0_i32_0 : i32
    scf.if %2 {
      %cst_10 = arith.constant 0.000000e+00 : f32
      %15 = vector.broadcast %cst_10 : f32 to vector<8x128xf32>
      %c0_11 = arith.constant 0 : index
      %c0_12 = arith.constant 0 : index
      %16 = vector.load %arg4[%c0_11, %c0_12] : memref<8x128xf32, #tpu.memory_space<vmem>>, vector<8x128xf32>
      tpu.vector_store %arg4[%c0_11, %c0_12], %15 {strides = array<i32>} : memref<8x128xf32, #tpu.memory_space<vmem>>, vector<8x128xf32>,
    } else {
    }
    %c0 = arith.constant 0 : index
    %c0_1 = arith.constant 0 : index
    %3 = vector.load %arg1[%c0, %c0_1] : memref<8x128xf32, #tpu.memory_space<vmem>>, vector<8x128xf32>
    %c0_2 = arith.constant 0 : index
    %c0_3 = arith.constant 0 : index
    %4 = vector.load %arg2[%c0_2, %c0_3] : memref<8x128xf32, #tpu.memory_space<vmem>>, vector<8x128xf32>
    %5 = arith.subf %3, %4 : vector<8x128xf32>
    %6 = arith.mulf %5, %5 : vector<8x128xf32>
    %c0_4 = arith.constant 0 : index
    %c0_5 = arith.constant 0 : index
    %7 = vector.load %arg4[%c0_4, %c0_5] : memref<8x128xf32, #tpu.memory_space<vmem>>, vector<8x128xf32>
    %8 = vector.shape_cast %6 : vector<8x128xf32> to vector<1x8x128xf32>
    %cst = arith.constant dense<0.000000e+00> : vector<8x128xf32>
    %9 = vector.multi_reduction <add>, %8, %cst [0] : vector<1x8x128xf32> to vector<8x128xf32>
    %10 = arith.addf %7, %9 : vector<8x128xf32>
    %c0_6 = arith.constant 0 : index
    %c0_7 = arith.constant 0 : index
    %11 = vector.load %arg4[%c0_6, %c0_7] : memref<8x128xf32, #tpu.memory_space<vmem>>, vector<8x128xf32>
    tpu.vector_store %arg4[%c0_6, %c0_7], %10 {strides = array<i32>} : memref<8x128xf32, #tpu.memory_space<vmem>>, vector<8x128xf32>,
    %c0_i32_8 = arith.constant 0 : i32
    %12 = arith.cmpi eq, %arg0, %c0_i32_8 : i32
    %13 = arith.extui %12 : i1 to i32
    %c0_i32_9 = arith.constant 0 : i32
    %14 = arith.cmpi ne, %13, %c0_i32_9 : i32
    scf.if %14 {
      %c0_10 = arith.constant 0 : index
      %c0_11 = arith.constant 0 : index
      %15 = vector.load %arg4[%c0_10, %c0_11] : memref<8x128xf32, #tpu.memory_space<vmem>>, vector<8x128xf32>
      %16 = vector.shape_cast %15 : vector<8x128xf32> to vector<1x8x128xf32>
      %cst_12 = arith.constant dense<0.000000e+00> : vector<1xf32>
      %17 = vector.multi_reduction <add>, %16, %cst_12 [1, 2] : vector<1x8x128xf32> to vector<1xf32>
      %18 = vector.shape_cast %17 : vector<1xf32> to vector<1x1x1xf32>
      %19 = vector.extract %18[0, 0, 0] : f32 from vector<1x1x1xf32>
      %20 = vector.broadcast %19 : f32 to vector<1x1xf32>
      %cst_13 = arith.constant 3.906250e-03 : f32
      %21 = vector.broadcast %cst_13 : f32 to vector<1x1xf32>
      %22 = arith.mulf %20, %21 : vector<1x1xf32>
      %c0_14 = arith.constant 0 : index
      %c0_15 = arith.constant 0 : index
      %23 = vector.load %arg3[%c0_14, %c0_15] : memref<1x1xf32, #tpu.memory_space<vmem>>, vector<1x1xf32>
      tpu.vector_store %arg3[%c0_14, %c0_15], %22 {strides = array<i32>} : memref<1x1xf32, #tpu.memory_space<vmem>>, vector<1x1xf32>,
    } else {
    }
    return
  }
  func.func @transform_0(%arg0: i32) -> (i32, i32) {
    %c0_i32 = arith.constant 0 : i32
    %c0_i32_0 = arith.constant 0 : i32
    return %arg0, %c0_i32 : i32, i32
  }
  func.func @transform_1(%arg0: i32) -> (i32, i32) {
    %c0_i32 = arith.constant 0 : i32
    %c0_i32_0 = arith.constant 0 : i32
    return %arg0, %c0_i32 : i32, i32
  }
  func.func @transform_2(%arg0: i32) -> (i32, i32) {
    %c0_i32 = arith.constant 0 : i32
    %c0_i32_0 = arith.constant 0 : i32
    %c0_i32_1 = arith.constant 0 : i32
    return %c0_i32, %c0_i32_0 : i32, i32
  }
}

</mosaic_0001>

<bundles_post_ra>
// kernel: net_forward.12
= control target key start
LH: loop header
LB: loop body
LE: loop exit
PB: predicated region body
PF: predicated region fallthrough
CT: control target
= control target key end

     0   :  { %s991_s12 = smov 0   ;;  %s1158_s0 = inlined_call_operand.vmem [shape: bf16[512,32], index: 0, kind: input, shape index: {}]   ;;  %s1159_s1 = inlined_call_operand.vmem [shape: bf16[32,8], index: 1, kind: input, shape index: {}]   ;;  %s1160_s2 = inlined_call_operand.vmem [shape: f32[1,8], index: 2, kind: input, shape index: {}]   ;;  %s1161_s3 = inlined_call_operand.vmem [shape: bf16[512,8], index: 3, kind: output, shape index: {}]  }
   0x1 LB: > { %s769_s13 = sadd.s32 4294967295, %s969_s12   ;;  %p773_p0 = scmp.ge.s32.totalorder %s969_s12, 1  ;;  %s969_s12 = sphi %s991_s12, %s13_s12  }
   0x2   : > { %p138_p1 = scmp.lt.s32.totalorder %s969_s12, 3 }
   0x4   : > { %p139_p2 = pnand %p773_p0, %p138_p1 }
   0x5   : > { %v945_v0 = vld [vmem:[%s1159_s1] sm:$0xff] (!%p139_p2)   ;;  %s774_s16 = sshll.u32 (!%p139_p2), %s769_s13, 5  ;;  %v946_v1 = vld [vmem:[%s1159_s1 + $0x8] sm:$0xff] (!%p139_p2)   ;;  %vm310_vm0 = vcmask (!%p139_p2), 261120   ;;  %vm680_vm1 = vcmask (!%p139_p2), 60416  }
   0x6   : > { %142 = sbr.rel (%p139_p2) target bundleno = 265 (0x109), region = 32  ;;  %p163_p3 = scmp.lt.s32.totalorder (!%p139_p2), %s774_s16, 63  ;;  %897 = vmatprep.subr.bf16.mxu0 (!%p139_p2), %v945_v0  ;;  %933 = vmatprep.subr.bf16.mxu1 (!%p139_p2), %v945_v0  ;;  %v1050_v18 = vld [vmem:[%s1160_s2] ss:$0 sm:$0xff] (!%p139_p2) }
   0x7   : > { %898 = vmatpush3.bf16.msra.mxu0 (!%p139_p2), %v945_v0  ;;  %935 = vmatpush3.bf16.msra.mxu1 (!%p139_p2), %v945_v0 }
   0x8   : > { %899 = vmatprep.subr.bf16.mxu0 (!%p139_p2), %v946_v1  ;;  %934 = vmatprep.subr.bf16.mxu1 (!%p139_p2), %v946_v1 }
   0xb   : > { %900 = vmatpush3.bf16.msra.mxu0 (!%p139_p2), %v946_v1  ;;  %936 = vmatpush3.bf16.msra.mxu1 (!%p139_p2), %v946_v1 }
   0xd   : > { %s1163_s16 = smov (!%p163_p3, %s774_s16), 63 }
   0xe   : > { %s775_s19 = sshll.u32 %s1163_s16, 2 }
   0xf   : > { %s1013_s22 = scalar_lea.vmem %s1158_s0, %s775_s19  ;;  %s1062_s27 = scalar_lea.vmem %s1161_s3, %s775_s19 }
  0x10   : > { %v947_v2 = vld [vmem:[%s1013_s22] sm:$0xff]   ;;  %v949_v4 = vld [vmem:[%s1013_s22 + $0x8] sm:$0xff]   ;;  %v951_v6 = vld [vmem:[%s1013_s22 + $0x10] sm:$0xff]  }
  0x11   : > { %v948_v3 = vld [vmem:[%s1013_s22 + $0x40] sm:$0xff]   ;;  %901 = vmatprep.mubr.msk.bf16.mxu0 %vm310_vm0, %v947_v2  ;;  %v950_v5 = vld [vmem:[%s1013_s22 + $0x48] sm:$0xff]   ;;  %v952_v7 = vld [vmem:[%s1013_s22 + $0x50] sm:$0xff]  }
  0x12   : > { %917 = vmatprep.mubr.msk.bf16.mxu1 %vm310_vm0, %v948_v3  ;;  %902 = vmatmul.mubr.msk.bf16.vlgmr.msra.gmra.mrb[0].mxu0 %vm310_vm0, %v949_v4  ;;  %v953_v8 = vld [vmem:[%s1013_s22 + $0x18] sm:$0xff]   ;;  %v955_v10 = vld [vmem:[%s1013_s22 + $0x20] sm:$0xff]   ;;  %v957_v12 = vld [vmem:[%s1013_s22 + $0x28] sm:$0xff]  }
  0x13   : > { %918 = vmatmul.mubr.msk.bf16.vlgmr.msra.gmra.mrb[0].mxu1 %vm310_vm0, %v950_v5  ;;  %905 = vmatprep.mubr.msk.bf16.mxu0 %vm310_vm0, %v951_v6  ;;  %v954_v9 = vld [vmem:[%s1013_s22 + $0x58] sm:$0xff]   ;;  %v956_v11 = vld [vmem:[%s1013_s22 + $0x60] sm:$0xff]   ;;  %v958_v13 = vld [vmem:[%s1013_s22 + $0x68] sm:$0xff]  }
  0x14   : > { %921 = vmatprep.mubr.msk.bf16.mxu1 %vm310_vm0, %v952_v7  ;;  %v959_v14 = vld [vmem:[%s1013_s22 + $0x30] sm:$0xff]   ;;  %v961_v16 = vld [vmem:[%s1013_s22 + $0x38] sm:$0xff]  }
  0x15   : > { %v960_v15 = vld [vmem:[%s1013_s22 + $0x70] sm:$0xff]   ;;  %v962_v17 = vld [vmem:[%s1013_s22 + $0x78] sm:$0xff]  }
  0x1a   : > { %906 = vmatmul.mubr.msk.bf16.gmra.mrb[4].mxu0 %vm310_vm0, %v953_v8 }
  0x1b   : > { %922 = vmatmul.mubr.msk.bf16.gmra.mrb[4].mxu1 %vm310_vm0, %v954_v9  ;;  %909 = vmatprep.mubr.msk.bf16.mxu0 %vm310_vm0, %v955_v10 }
  0x1c   : > { %925 = vmatprep.mubr.msk.bf16.mxu1 %vm310_vm0, %v956_v11 }
  0x22   : > { %910 = vmatmul.mubr.msk.bf16.gmra.mrb[8].mxu0 %vm310_vm0, %v957_v12 }
  0x23   : > { %926 = vmatmul.mubr.msk.bf16.gmra.mrb[8].mxu1 %vm310_vm0, %v958_v13  ;;  %913 = vmatprep.mubr.msk.bf16.mxu0 %vm310_vm0, %v959_v14 }
  0x24   : > { %929 = vmatprep.mubr.msk.bf16.mxu1 %vm310_vm0, %v960_v15 }
  0x2a   : > { %914 = vmatmul.mubr.msk.bf16.gmra.mrb[12].mxu0 %vm310_vm0, %v961_v16 }
  0x2b   : > { %930 = vmatmul.mubr.msk.bf16.gmra.mrb[12].mxu1 %vm310_vm0, %v962_v17 }
  0xe5   : > { %v903_v19 = vpop.f32.mrb[0].mxu0 }
  0xe6   : > { %v402_v20 = vadd.f32 %v903_v19, %v1050_v18  ;;  %v919_v21 = vpop.f32.mrb[0].mxu1  ;;  %v393_v22 = vpop.f32.mrb[1].mxu0 }
  0xe7   : > { %v466_v23 = vadd.f32 %v919_v21, %v1050_v18  ;;  %v394_v24 = vadd.f32 %v1050_v18, %v393_v22  ;;  %v457_v25 = vpop.f32.mrb[1].mxu1  ;;  %v904_v26 = vpop.f32.mrb[2].mxu0 }
  0xe8   : > { %v522_v27 = vmax.f32 %v402_v20, 0.0  ;;  %v458_v28 = vadd.f32 %v1050_v18, %v457_v25  ;;  %v405_v29 = vadd.f32 %v904_v26, %v1050_v18  ;;  %v920_v30 = vpop.f32.mrb[2].mxu1  ;;  %v396_v31 = vpop.f32.mrb[3].mxu0 }
  0xe9   : > { %v538_v32 = vmax.f32 %v466_v23, 0.0  ;;  %v520_v33 = vmax.f32 %v394_v24, 0.0  ;;  %v469_v34 = vadd.f32 %v920_v30, %v1050_v18  ;;  %v397_v35 = vadd.f32 %v1050_v18, %v396_v31  ;;  %v460_v36 = vpop.f32.mrb[3].mxu1 }
  0xea   : > { %v849_v37 = vpack.c.bf16 %v522_v27, %v522_v27  ;;  %v536_v38 = vmax.f32 %v458_v28, 0.0  ;;  %v523_v39 = vmax.f32 %v405_v29, 0.0  ;;  %v461_v40 = vadd.f32 %v1050_v18, %v460_v36 }
  0xeb   : > { %v865_v41 = vpack.c.bf16 %v538_v32, %v538_v32  ;;  %v847_v42 = vpack.c.bf16 %v520_v33, %v520_v33  ;;  %v539_v43 = vmax.f32 %v469_v34, 0.0  ;;  %v521_v44 = vmax.f32 %v397_v35, 0.0 }
  0xec   : > { %683 = vst.msk [vmem:[%s1062_s27 + $0x8] sm:$0xf] %vm680_vm1, %v849_v37  ;;  %v863_v45 = vpack.c.bf16 %v536_v38, %v536_v38  ;;  %v850_v46 = vpack.c.bf16 %v523_v39, %v523_v39  ;;  %v537_v47 = vmax.f32 %v461_v40, 0.0 }
  0xed   : > { %699 = vst.msk [vmem:[%s1062_s27 + $0x48] sm:$0xf] %vm680_vm1, %v865_v41  ;;  %681 = vst.msk [vmem:[%s1062_s27] sm:$0xf] %vm680_vm1, %v847_v42  ;;  %v866_v48 = vpack.c.bf16 %v539_v43, %v539_v43  ;;  %v848_v49 = vpack.c.bf16 %v521_v44, %v521_v44  ;;  %v907_v50 = vpop.f32.mrb[4].mxu0 }
  0xee   : > { %697 = vst.msk [vmem:[%s1062_s27 + $0x40] sm:$0xf] %vm680_vm1, %v863_v45  ;;  %684 = vst.msk [vmem:[%s1062_s27 + $0xc] sm:$0xf] %vm680_vm1, %v850_v46  ;;  %v864_v51 = vpack.c.bf16 %v537_v47, %v537_v47  ;;  %v418_v52 = vadd.f32 %v907_v50, %v1050_v18  ;;  %v923_v53 = vpop.f32.mrb[4].mxu1  ;;  %v409_v54 = vpop.f32.mrb[5].mxu0 }
  0xef   : > { %700 = vst.msk [vmem:[%s1062_s27 + $0x4c] sm:$0xf] %vm680_vm1, %v866_v48  ;;  %682 = vst.msk [vmem:[%s1062_s27 + $0x4] sm:$0xf] %vm680_vm1, %v848_v49  ;;  %v482_v55 = vadd.f32 %v923_v53, %v1050_v18  ;;  %v410_v56 = vadd.f32 %v1050_v18, %v409_v54  ;;  %v473_v57 = vpop.f32.mrb[5].mxu1  ;;  %v908_v58 = vpop.f32.mrb[6].mxu0 }
  0xf0   : > { %698 = vst.msk [vmem:[%s1062_s27 + $0x44] sm:$0xf] %vm680_vm1, %v864_v51  ;;  %v526_v59 = vmax.f32 %v418_v52, 0.0  ;;  %v474_v60 = vadd.f32 %v1050_v18, %v473_v57  ;;  %v421_v61 = vadd.f32 %v908_v58, %v1050_v18  ;;  %v924_v62 = vpop.f32.mrb[6].mxu1  ;;  %v412_v63 = vpop.f32.mrb[7].mxu0 }
  0xf1   : > { %v542_v0 = vmax.f32 %v482_v55, 0.0  ;;  %v524_v1 = vmax.f32 %v410_v56, 0.0  ;;  %v485_v2 = vadd.f32 %v924_v62, %v1050_v18  ;;  %v413_v3 = vadd.f32 %v1050_v18, %v412_v63  ;;  %v476_v4 = vpop.f32.mrb[7].mxu1 }
  0xf2   : > { %v853_v5 = vpack.c.bf16 %v526_v59, %v526_v59  ;;  %v540_v6 = vmax.f32 %v474_v60, 0.0  ;;  %v527_v7 = vmax.f32 %v421_v61, 0.0  ;;  %v477_v8 = vadd.f32 %v1050_v18, %v476_v4 }
  0xf3   : > { %v869_v9 = vpack.c.bf16 %v542_v0, %v542_v0  ;;  %v851_v10 = vpack.c.bf16 %v524_v1, %v524_v1  ;;  %v543_v11 = vmax.f32 %v485_v2, 0.0  ;;  %v525_v12 = vmax.f32 %v413_v3, 0.0 }
  0xf4   : > { %687 = vst.msk [vmem:[%s1062_s27 + $0x18] sm:$0xf] %vm680_vm1, %v853_v5  ;;  %v867_v13 = vpack.c.bf16 %v540_v6, %v540_v6  ;;  %v854_v14 = vpack.c.bf16 %v527_v7, %v527_v7  ;;  %v541_v15 = vmax.f32 %v477_v8, 0.0 }
  0xf5   : > { %703 = vst.msk [vmem:[%s1062_s27 + $0x58] sm:$0xf] %vm680_vm1, %v869_v9  ;;  %685 = vst.msk [vmem:[%s1062_s27 + $0x10] sm:$0xf] %vm680_vm1, %v851_v10  ;;  %v870_v16 = vpack.c.bf16 %v543_v11, %v543_v11  ;;  %v852_v17 = vpack.c.bf16 %v525_v12, %v525_v12  ;;  %v911_v19 = vpop.f32.mrb[8].mxu0 }
  0xf6   : > { %701 = vst.msk [vmem:[%s1062_s27 + $0x50] sm:$0xf] %vm680_vm1, %v867_v13  ;;  %688 = vst.msk [vmem:[%s1062_s27 + $0x1c] sm:$0xf] %vm680_vm1, %v854_v14  ;;  %v868_v20 = vpack.c.bf16 %v541_v15, %v541_v15  ;;  %v434_v21 = vadd.f32 %v911_v19, %v1050_v18  ;;  %v927_v22 = vpop.f32.mrb[8].mxu1  ;;  %v425_v23 = vpop.f32.mrb[9].mxu0 }
  0xf7   : > { %704 = vst.msk [vmem:[%s1062_s27 + $0x5c] sm:$0xf] %vm680_vm1, %v870_v16  ;;  %686 = vst.msk [vmem:[%s1062_s27 + $0x14] sm:$0xf] %vm680_vm1, %v852_v17  ;;  %v498_v24 = vadd.f32 %v927_v22, %v1050_v18  ;;  %v426_v25 = vadd.f32 %v1050_v18, %v425_v23  ;;  %v489_v26 = vpop.f32.mrb[9].mxu1  ;;  %v912_v27 = vpop.f32.mrb[10].mxu0 }
  0xf8   : > { %702 = vst.msk [vmem:[%s1062_s27 + $0x54] sm:$0xf] %vm680_vm1, %v868_v20  ;;  %v530_v28 = vmax.f32 %v434_v21, 0.0  ;;  %v490_v29 = vadd.f32 %v1050_v18, %v489_v26  ;;  %v437_v30 = vadd.f32 %v912_v27, %v1050_v18  ;;  %v928_v31 = vpop.f32.mrb[10].mxu1  ;;  %v428_v32 = vpop.f32.mrb[11].mxu0 }
  0xf9   : > { %v546_v33 = vmax.f32 %v498_v24, 0.0  ;;  %v528_v34 = vmax.f32 %v426_v25, 0.0  ;;  %v501_v35 = vadd.f32 %v928_v31, %v1050_v18  ;;  %v429_v36 = vadd.f32 %v1050_v18, %v428_v32  ;;  %v492_v37 = vpop.f32.mrb[11].mxu1 }
  0xfa   : > { %v857_v38 = vpack.c.bf16 %v530_v28, %v530_v28  ;;  %v544_v39 = vmax.f32 %v490_v29, 0.0  ;;  %v531_v40 = vmax.f32 %v437_v30, 0.0  ;;  %v493_v41 = vadd.f32 %v1050_v18, %v492_v37 }
  0xfb   : > { %v873_v42 = vpack.c.bf16 %v546_v33, %v546_v33  ;;  %v855_v43 = vpack.c.bf16 %v528_v34, %v528_v34  ;;  %v547_v44 = vmax.f32 %v501_v35, 0.0  ;;  %v529_v45 = vmax.f32 %v429_v36, 0.0 }
  0xfc   : > { %691 = vst.msk [vmem:[%s1062_s27 + $0x28] sm:$0xf] %vm680_vm1, %v857_v38  ;;  %v871_v46 = vpack.c.bf16 %v544_v39, %v544_v39  ;;  %v858_v47 = vpack.c.bf16 %v531_v40, %v531_v40  ;;  %v545_v48 = vmax.f32 %v493_v41, 0.0 }
  0xfd   : > { %707 = vst.msk [vmem:[%s1062_s27 + $0x68] sm:$0xf] %vm680_vm1, %v873_v42  ;;  %689 = vst.msk [vmem:[%s1062_s27 + $0x20] sm:$0xf] %vm680_vm1, %v855_v43  ;;  %v874_v49 = vpack.c.bf16 %v547_v44, %v547_v44  ;;  %v856_v50 = vpack.c.bf16 %v529_v45, %v529_v45  ;;  %v915_v51 = vpop.f32.mrb[12].mxu0 }
  0xfe   : > { %705 = vst.msk [vmem:[%s1062_s27 + $0x60] sm:$0xf] %vm680_vm1, %v871_v46  ;;  %692 = vst.msk [vmem:[%s1062_s27 + $0x2c] sm:$0xf] %vm680_vm1, %v858_v47  ;;  %v872_v52 = vpack.c.bf16 %v545_v48, %v545_v48  ;;  %v450_v53 = vadd.f32 %v915_v51, %v1050_v18  ;;  %v931_v54 = vpop.f32.mrb[12].mxu1  ;;  %v441_v55 = vpop.f32.mrb[13].mxu0 }
  0xff   : > { %708 = vst.msk [vmem:[%s1062_s27 + $0x6c] sm:$0xf] %vm680_vm1, %v874_v49  ;;  %690 = vst.msk [vmem:[%s1062_s27 + $0x24] sm:$0xf] %vm680_vm1, %v856_v50  ;;  %v514_v56 = vadd.f32 %v931_v54, %v1050_v18  ;;  %v442_v57 = vadd.f32 %v1050_v18, %v441_v55  ;;  %v505_v58 = vpop.f32.mrb[13].mxu1  ;;  %v916_v59 = vpop.f32.mrb[14].mxu0 }
 0x100   : > { %706 = vst.msk [vmem:[%s1062_s27 + $0x64] sm:$0xf] %vm680_vm1, %v872_v52  ;;  %v534_v60 = vmax.f32 %v450_v53, 0.0  ;;  %v506_v61 = vadd.f32 %v1050_v18, %v505_v58  ;;  %v453_v62 = vadd.f32 %v916_v59, %v1050_v18  ;;  %v932_v63 = vpop.f32.mrb[14].mxu1  ;;  %v444_v0 = vpop.f32.mrb[15].mxu0 }
 0x101   : > { %v550_v1 = vmax.f32 %v514_v56, 0.0  ;;  %v532_v2 = vmax.f32 %v442_v57, 0.0  ;;  %v517_v3 = vadd.f32 %v932_v63, %v1050_v18  ;;  %v445_v4 = vadd.f32 %v1050_v18, %v444_v0  ;;  %v508_v5 = vpop.f32.mrb[15].mxu1 }
 0x102   : > { %v861_v6 = vpack.c.bf16 %v534_v60, %v534_v60  ;;  %v548_v7 = vmax.f32 %v506_v61, 0.0  ;;  %v535_v8 = vmax.f32 %v453_v62, 0.0  ;;  %v509_v9 = vadd.f32 %v1050_v18, %v508_v5 }
 0x103   : > { %v877_v10 = vpack.c.bf16 %v550_v1, %v550_v1  ;;  %v859_v11 = vpack.c.bf16 %v532_v2, %v532_v2  ;;  %v551_v12 = vmax.f32 %v517_v3, 0.0  ;;  %v533_v13 = vmax.f32 %v445_v4, 0.0 }
 0x104   : > { %695 = vst.msk [vmem:[%s1062_s27 + $0x38] sm:$0xf] %vm680_vm1, %v861_v6  ;;  %v875_v14 = vpack.c.bf16 %v548_v7, %v548_v7  ;;  %v862_v15 = vpack.c.bf16 %v535_v8, %v535_v8  ;;  %v549_v16 = vmax.f32 %v509_v9, 0.0 }
 0x105   : > { %711 = vst.msk [vmem:[%s1062_s27 + $0x78] sm:$0xf] %vm680_vm1, %v877_v10  ;;  %693 = vst.msk [vmem:[%s1062_s27 + $0x30] sm:$0xf] %vm680_vm1, %v859_v11  ;;  %v878_v17 = vpack.c.bf16 %v551_v12, %v551_v12  ;;  %v860_v19 = vpack.c.bf16 %v533_v13, %v533_v13 }
 0x106   : > { %709 = vst.msk [vmem:[%s1062_s27 + $0x70] sm:$0xf] %vm680_vm1, %v875_v14  ;;  %696 = vst.msk [vmem:[%s1062_s27 + $0x3c] sm:$0xf] %vm680_vm1, %v862_v15  ;;  %v876_v18 = vpack.c.bf16 %v549_v16, %v549_v16 }
 0x107   : > { %712 = vst.msk [vmem:[%s1062_s27 + $0x7c] sm:$0xf] %vm680_vm1, %v878_v17  ;;  %694 = vst.msk [vmem:[%s1062_s27 + $0x34] sm:$0xf] %vm680_vm1, %v860_v19 }
 0x108   : > { %710 = vst.msk [vmem:[%s1062_s27 + $0x74] sm:$0xf] %vm680_vm1, %v876_v18 }
 0x109 PF: > { %s13_s12 = sadd.s32 1, %s969_s12  }
 0x10a   : > { %p10_p4 = scmp.ge.s32.totalorder %s13_s12, 4  }
 0x10c   :  { %12 = sbr.rel (!%p10_p4) target bundleno = 1 (0x1), region = 62 }

// kernel: net_forward.13
= control target key start
LH: loop header
LB: loop body
LE: loop exit
PB: predicated region body
PF: predicated region fallthrough
CT: control target
= control target key end

     0   :  { %s556_s12 = smov 0   ;;  %s610_s0 = inlined_call_operand.vmem [shape: bf16[128,80], index: 0, kind: input, shape index: {}]   ;;  %s611_s1 = inlined_call_operand.vmem [shape: bf16[80,16], index: 1, kind: input, shape index: {}]   ;;  %s612_s2 = inlined_call_operand.vmem [shape: f32[1,16], index: 2, kind: input, shape index: {}]   ;;  %s613_s3 = inlined_call_operand.vmem [shape: bf16[128,16], index: 3, kind: output, shape index: {}]  }
   0x1 LB: > { %s433_s13 = sadd.s32 4294967295, %s534_s12   ;;  %p437_p0 = scmp.ge.s32.totalorder %s534_s12, 1  ;;  %s534_s12 = sphi %s556_s12, %s13_s12  }
   0x2   : > { %p138_p1 = scmp.lt.s32.totalorder %s534_s12, 3 }
   0x4   : > { %p139_p2 = pnand %p437_p0, %p138_p1 }
   0x5   : > { %v519_v0 = vld [vmem:[%s611_s1] sm:$0xff] (!%p139_p2)   ;;  %s438_s16 = sshll.u32 (!%p139_p2), %s433_s13, 3  ;;  %v520_v1 = vld [vmem:[%s611_s1 + $0x8] sm:$0xff] (!%p139_p2)   ;;  %v521_v2 = vld [vmem:[%s611_s1 + $0x10] sm:$0xff] (!%p139_p2)   ;;  %vm250_vm0 = vcmask (!%p139_p2), 654336   ;;  %vm368_vm1 = vcmask (!%p139_p2), 125952  }
   0x6   : > { %142 = sbr.rel (%p139_p2) target bundleno = 248 (0xf8), region = 32  ;;  %p163_p3 = scmp.lt.s32.totalorder (!%p139_p2), %s438_s16, 15  ;;  %483 = vmatprep.subr.bf16.mxu0 (!%p139_p2), %v519_v0  ;;  %501 = vmatprep.subr.bf16.mxu1 (!%p139_p2), %v519_v0  ;;  %v522_v3 = vld [vmem:[%s611_s1 + $0x18] sm:$0xff] (!%p139_p2)   ;;  %v523_v6 = vld [vmem:[%s611_s1 + $0x20] sm:$0xff] (!%p139_p2)  }
   0x7   : > { %484 = vmatpush3.bf16.msra.mxu0 (!%p139_p2), %v519_v0  ;;  %506 = vmatpush3.bf16.msra.mxu1 (!%p139_p2), %v519_v0  ;;  %v442_v9 = vld [vmem:[%s612_s2] ss:$0 sm:$0xff] (!%p139_p2) }
   0x8   : > { %485 = vmatprep.subr.bf16.mxu0 (!%p139_p2), %v520_v1  ;;  %502 = vmatprep.subr.bf16.mxu1 (!%p139_p2), %v520_v1 }
   0xb   : > { %486 = vmatpush3.bf16.msra.mxu0 (!%p139_p2), %v520_v1  ;;  %507 = vmatpush3.bf16.msra.mxu1 (!%p139_p2), %v520_v1 }
   0xc   : > { %487 = vmatprep.subr.bf16.mxu0 (!%p139_p2), %v521_v2  ;;  %503 = vmatprep.subr.bf16.mxu1 (!%p139_p2), %v521_v2 }
   0xd   : > { %s615_s16 = smov (!%p163_p3, %s438_s16), 15 }
   0xe   : > { %s439_s21 = sshll.u32 %s615_s16, 2 }
   0xf   : > { %s166_s26 = scalar_lea.vmem %s610_s0, %s439_s21  ;;  %488 = vmatpush3.bf16.msra.mxu0 %v521_v2  ;;  %508 = vmatpush3.bf16.msra.mxu1 %v521_v2  ;;  %s172_s6 = scalar_lea.vmem %s613_s3, %s439_s21 }
  0x10   : > { %v524_v4 = vld [vmem:[%s166_s26] sm:$0xff]   ;;  %v525_v5 = vld [vmem:[%s166_s26 + $0x10] sm:$0xff]   ;;  %489 = vmatprep.subr.bf16.mxu0 %v522_v3  ;;  %504 = vmatprep.subr.bf16.mxu1 %v522_v3  ;;  %v526_v7 = vld [vmem:[%s166_s26 + $0x8] sm:$0xff]  }
  0x11   : > { %493 = vmatprep.mubr.msk.bf16.mxu0 %vm250_vm0, %v524_v4  ;;  %497 = vmatprep.mubr.msk.bf16.mxu1 %vm250_vm0, %v525_v5  ;;  %v527_v8 = vld [vmem:[%s166_s26 + $0x18] sm:$0xff]  }
  0x13   : > { %490 = vmatpush3.bf16.msra.mxu0 %v522_v3  ;;  %509 = vmatpush3.bf16.msra.mxu1 %v522_v3 }
  0x14   : > { %491 = vmatprep.subr.bf16.mxu0 %v523_v6  ;;  %505 = vmatprep.subr.bf16.mxu1 %v523_v6 }
  0x17   : > { %492 = vmatpush3.bf16.msra.mxu0 %v523_v6  ;;  %510 = vmatpush3.bf16.msra.mxu1 %v523_v6 }
  0x1a   : > { %494 = vmatmul.mubr.msk.bf16.vlgmr.msra.gmra.mrb[0].mxu0 %vm250_vm0, %v526_v7  ;;  %498 = vmatmul.mubr.msk.bf16.vlgmr.msra.gmra.mrb[0].mxu1 %vm250_vm0, %v527_v8 }
  0xed   : > { %v495_v10 = vpop.f32.mrb[0].mxu0  ;;  %v499_v11 = vpop.f32.mrb[0].mxu1 }
  0xee   : > { %v306_v12 = vadd.f32 %v495_v10, %v442_v9  ;;  %v322_v13 = vadd.f32 %v499_v11, %v442_v9  ;;  %v297_v14 = vpop.f32.mrb[1].mxu0  ;;  %v313_v15 = vpop.f32.mrb[1].mxu1 }
  0xef   : > { %v298_v16 = vadd.f32 %v442_v9, %v297_v14  ;;  %v314_v17 = vadd.f32 %v442_v9, %v313_v15  ;;  %v496_v18 = vpop.f32.mrb[2].mxu0  ;;  %v500_v19 = vpop.f32.mrb[2].mxu1 }
  0xf0   : > { %v330_v20 = vmax.f32 %v306_v12, 0.0  ;;  %v334_v21 = vmax.f32 %v322_v13, 0.0  ;;  %v309_v22 = vadd.f32 %v496_v18, %v442_v9  ;;  %v325_v23 = vadd.f32 %v500_v19, %v442_v9  ;;  %v300_v24 = vpop.f32.mrb[3].mxu0  ;;  %v316_v25 = vpop.f32.mrb[3].mxu1 }
  0xf1   : > { %v328_v26 = vmax.f32 %v298_v16, 0.0  ;;  %v332_v27 = vmax.f32 %v314_v17, 0.0  ;;  %v301_v28 = vadd.f32 %v442_v9, %v300_v24  ;;  %v317_v29 = vadd.f32 %v442_v9, %v316_v25 }
  0xf2   : > { %v468_v30 = vpack.c.bf16 %v330_v20, %v330_v20  ;;  %v472_v31 = vpack.c.bf16 %v334_v21, %v334_v21  ;;  %v331_v32 = vmax.f32 %v309_v22, 0.0  ;;  %v335_v33 = vmax.f32 %v325_v23, 0.0 }
  0xf3   : > { %v466_v34 = vpack.c.bf16 %v328_v26, %v328_v26  ;;  %v470_v35 = vpack.c.bf16 %v332_v27, %v332_v27  ;;  %v329_v36 = vmax.f32 %v301_v28, 0.0  ;;  %v333_v37 = vmax.f32 %v317_v29, 0.0 }
  0xf4   : > { %371 = vst.msk [vmem:[%s172_s6 + $0x8] sm:$0xf] %vm368_vm1, %v468_v30  ;;  %375 = vst.msk [vmem:[%s172_s6 + $0x18] sm:$0xf] %vm368_vm1, %v472_v31  ;;  %v469_v38 = vpack.c.bf16 %v331_v32, %v331_v32  ;;  %v473_v39 = vpack.c.bf16 %v335_v33, %v335_v33 }
  0xf5   : > { %369 = vst.msk [vmem:[%s172_s6] sm:$0xf] %vm368_vm1, %v466_v34  ;;  %373 = vst.msk [vmem:[%s172_s6 + $0x10] sm:$0xf] %vm368_vm1, %v470_v35  ;;  %v467_v40 = vpack.c.bf16 %v329_v36, %v329_v36  ;;  %v471_v41 = vpack.c.bf16 %v333_v37, %v333_v37 }
  0xf6   : > { %372 = vst.msk [vmem:[%s172_s6 + $0xc] sm:$0xf] %vm368_vm1, %v469_v38  ;;  %376 = vst.msk [vmem:[%s172_s6 + $0x1c] sm:$0xf] %vm368_vm1, %v473_v39 }
  0xf7   : > { %370 = vst.msk [vmem:[%s172_s6 + $0x4] sm:$0xf] %vm368_vm1, %v467_v40  ;;  %374 = vst.msk [vmem:[%s172_s6 + $0x14] sm:$0xf] %vm368_vm1, %v471_v41 }
  0xf8 PF: > { %s13_s12 = sadd.s32 1, %s534_s12  }
  0xf9   : > { %p10_p4 = scmp.ge.s32.totalorder %s13_s12, 4  }
  0xfb   :  { %12 = sbr.rel (!%p10_p4) target bundleno = 1 (0x1), region = 62 }

// kernel: net_forward.14
= control target key start
LH: loop header
LB: loop body
LE: loop exit
PB: predicated region body
PF: predicated region fallthrough
CT: control target
= control target key end

     0   :  { %s462_s12 = smov 0   ;;  %s513_s0 = inlined_call_operand.vmem [shape: bf16[32,144], index: 0, kind: input, shape index: {}]   ;;  %s514_s1 = inlined_call_operand.vmem [shape: bf16[144,32], index: 1, kind: input, shape index: {}]   ;;  %s515_s2 = inlined_call_operand.vmem [shape: f32[1,32], index: 2, kind: input, shape index: {}]   ;;  %s516_s3 = inlined_call_operand.vmem [shape: bf16[32,32], index: 3, kind: output, shape index: {}]  }
   0x1 LB: > { %s382_s13 = sadd.s32 4294967295, %s439_s12   ;;  %p386_p0 = scmp.ge.s32.totalorder %s439_s12, 1  ;;  %s439_s12 = sphi %s462_s12, %s13_s12  }
   0x2   : > { %p139_p1 = scmp.lt.s32.totalorder %s439_s12, 3 }
   0x4   : > { %p140_p2 = pnand %p386_p0, %p139_p1 }
   0x5   : > { %v421_v0 = vld [vmem:[%s514_s1] sm:$0xff] (!%p140_p2)   ;;  %v441_v1 = vmov (!%p140_p2), 0   ;;  %s387_s16 = sshll.u32 (!%p140_p2), %s382_s13, 1  ;;  %v422_v2 = vld [vmem:[%s514_s1 + $0x8] sm:$0xff] (!%p140_p2)   ;;  %v423_v3 = vld [vmem:[%s514_s1 + $0x10] sm:$0xff] (!%p140_p2)   ;;  %vm268_vm0 = vcmask (!%p140_p2), 130048  }
   0x6   : > { %143 = sbr.rel (%p140_p2) target bundleno = 263 (0x107), region = 32  ;;  %272 = vmatprep.subr.bf16.mxu0 (!%p140_p2), %v441_v1  ;;  %p165_p3 = scmp.lt.s32.totalorder (!%p140_p2), %s387_s16, 3  ;;  %v424_v4 = vld [vmem:[%s514_s1 + $0x18] sm:$0xff] (!%p140_p2)   ;;  %v425_v6 = vld [vmem:[%s514_s1 + $0x20] sm:$0xff] (!%p140_p2)   ;;  %v426_v7 = vld [vmem:[%s514_s1 + $0x28] sm:$0xff] (!%p140_p2)   ;;  %vm323_vm1 = vcmask (!%p140_p2), 257024  }
   0x7   : > { %273 = vmatpush1.bf16.msra.mxu0 (!%p140_p2), %v421_v0  ;;  %v427_v8 = vld [vmem:[%s514_s1 + $0x30] sm:$0xff] (!%p140_p2)   ;;  %v428_v9 = vld [vmem:[%s514_s1 + $0x38] sm:$0xff] (!%p140_p2)   ;;  %v429_v10 = vld [vmem:[%s514_s1 + $0x40] sm:$0xff] (!%p140_p2)  }
   0x8   : > { %274 = vmatprep.subr.bf16.mxu0 (!%p140_p2), %v441_v1  ;;  %v392_v12 = vld [vmem:[%s515_s2] ss:$0 sm:$0xff] (!%p140_p2) }
   0xb   : > { %275 = vmatpush1.bf16.msra.mxu0 (!%p140_p2), %v422_v2 }
   0xc   : > { %276 = vmatprep.subr.bf16.mxu0 (!%p140_p2), %v441_v1 }
   0xd   : > { %s518_s16 = smov (!%p165_p3, %s387_s16), 3 }
   0xe   : > { %s409_s21 = sshll.u32 %s518_s16, 3  ;;  %s391_s13 = sshll.u32 %s518_s16, 2 }
   0xf   : > { %s169_s24 = scalar_lea.vmem %s513_s0, %s409_s21  ;;  %277 = vmatpush1.bf16.msra.mxu0 %v423_v3  ;;  %s175_s17 = scalar_lea.vmem %s516_s3, %s391_s13 }
  0x10   : > { %v432_v5 = vld [vmem:[%s169_s24 + $0x4] ss:$8 sps:$4 sm:$0xff]   ;;  %278 = vmatprep.subr.bf16.mxu0 %v441_v1  ;;  %v430_v11 = vld [vmem:[%s169_s24] ss:$8 sps:$4 sm:$0xff]  }
  0x11   : > { %404 = vmatprep.mubr.msk.bf16.mxu0 %vm268_vm0, %v432_v5 }
  0x13   : > { %279 = vmatpush1.bf16.msra.mxu0 %v424_v4 }
  0x14   : > { %280 = vmatprep.subr.bf16.mxu0 %v441_v1 }
  0x17   : > { %281 = vmatpush1.bf16.msra.mxu0 %v425_v6 }
  0x18   : > { %282 = vmatprep.subr.bf16.mxu0 %v441_v1 }
  0x1b   : > { %283 = vmatpush1.bf16.msra.mxu0 %v426_v7 }
  0x1c   : > { %284 = vmatprep.subr.bf16.mxu0 %v441_v1 }
  0x1f   : > { %285 = vmatpush1.bf16.msra.mxu0 %v427_v8 }
  0x20   : > { %286 = vmatprep.subr.bf16.mxu0 %v441_v1 }
  0x23   : > { %287 = vmatpush1.bf16.msra.mxu0 %v428_v9 }
  0x24   : > { %288 = vmatprep.subr.bf16.mxu0 %v441_v1 }
  0x27   : > { %289 = vmatpush1.bf16.msra.mxu0 %v429_v10 }
  0x2a   : > { %305 = vmatmul.mubr.bf16.vlgmr.msra.gmra.mrb[0].mxu0 %v430_v11 }
  0xfd   : > { %v306_v13 = vpop.f32.mrb[0].mxu0 }
  0xfe   : > { %v307_v14 = vadd.f32 %v392_v12, %v306_v13  ;;  %v308_v15 = vpop.f32.mrb[1].mxu0 }
  0xff   : > { %v309_v16 = vpop.f32.mrb[2].mxu0 }
 0x100   : > { %v313_v17 = vmax.f32 %v307_v14, 0.0  ;;  %v310_v18 = vadd.f32 %v392_v12, %v309_v16  ;;  %v311_v19 = vpop.f32.mrb[3].mxu0 }
 0x102   : > { %v410_v20 = vpack.c.bf16 %v313_v17, %v313_v17  ;;  %v314_v21 = vmax.f32 %v310_v18, 0.0 }
 0x104   : > { %324 = vst.msk [vmem:[%s175_s17] sm:$0xf] %vm323_vm1, %v410_v20  ;;  %v411_v22 = vpack.c.bf16 %v314_v21, %v314_v21 }
 0x106   : > { %325 = vst.msk [vmem:[%s175_s17 + $0x4] sm:$0xf] %vm323_vm1, %v411_v22 }
 0x107 PF: > { %s13_s12 = sadd.s32 1, %s439_s12  }
 0x108   : > { %p10_p4 = scmp.ge.s32.totalorder %s13_s12, 4  }
 0x10a   :  { %12 = sbr.rel (!%p10_p4) target bundleno = 1 (0x1), region = 62 }

// kernel: net_forward.15
= control target key start
LH: loop header
LB: loop body
LE: loop exit
PB: predicated region body
PF: predicated region fallthrough
CT: control target
= control target key end

     0   :  { %v347_v1 = vmov 0.0   ;;  %vm348_vm0 = vmmov 0   ;;  %vm178_vm1 = vcmask 261120   ;;  %s437_s1 = inlined_call_operand.vmem [shape: bf16[288,32], index: 1, kind: input, shape index: {}]   ;;  %s438_s0 = inlined_call_operand.vmem [shape: bf16[8,288], index: 0, kind: input, shape index: {}]   ;;  %s439_s2 = inlined_call_operand.vmem [shape: f32[1,32], index: 2, kind: input, shape index: {}]   ;;  %s440_s3 = inlined_call_operand.vmem [shape: f32[8,32], index: 3, kind: output, shape index: {}]  }
   0x1   :  { %v326_v0 = vld [vmem:[%s437_s1 + $0x40] sm:$0xff]   ;;  %316 = vmatprep.subr.bf16.mxu1 %v347_v1  ;;  %320 = vmatprep.mubr.msk.bf16.mxu1 %vm348_vm0, %v347_v1  ;;  %v328_v3 = vld [vmem:[%s437_s1 + $0x48] sm:$0xff]   ;;  %v330_v5 = vld [vmem:[%s437_s1 + $0x50] sm:$0xff]  }
   0x2   :  { %v327_v2 = vld [vmem:[%s437_s1] sm:$0xff]   ;;  %291 = vmatprep.subr.bf16.mxu0 %v326_v0  ;;  %v329_v4 = vld [vmem:[%s437_s1 + $0x8] sm:$0xff]   ;;  %v331_v6 = vld [vmem:[%s437_s1 + $0x10] sm:$0xff]  }
   0x3   :  { %292 = vmatpush3.bf16.msra.mxu0 %v327_v2  ;;  %v332_v7 = vld [vmem:[%s437_s1 + $0x58] sm:$0xff]   ;;  %v334_v9 = vld [vmem:[%s437_s1 + $0x60] sm:$0xff]   ;;  %v336_v12 = vld [vmem:[%s437_s1 + $0x68] sm:$0xff]  }
   0x4   :  { %293 = vmatprep.subr.bf16.mxu0 %v328_v3  ;;  %v333_v8 = vld [vmem:[%s437_s1 + $0x18] sm:$0xff]   ;;  %v340_v10 = vld [vmem:[%s437_s1 + $0x80] sm:$0xff]   ;;  %v346_v15 = vld [vmem:[%s437_s1 + $0x88] sm:$0xff]  }
   0x5   :  { %v335_v11 = vld [vmem:[%s437_s1 + $0x20] sm:$0xff]   ;;  %317 = vmatpush3.bf16.msra.mxu1 %v340_v10  ;;  %v337_v16 = vld [vmem:[%s437_s1 + $0x28] sm:$0xff]   ;;  %v338_v17 = vld [vmem:[%s437_s1 + $0x70] sm:$0xff]  }
   0x6   :  { %318 = vmatprep.subr.bf16.mxu1 %v347_v1  ;;  %v15_v13 = vld [vmem:[%s438_s0] sm:$0xff]  ;;  %v345_v18 = vld [vmem:[%s438_s0 + $0x8] ss:$0 sps:$4 sm:$0xff]   ;;  %v339_v19 = vld [vmem:[%s437_s1 + $0x30] sm:$0xff]  }
   0x7   :  { %294 = vmatpush3.bf16.msra.mxu0 %v329_v4  ;;  %v270_v14 = vcombine.high %v15_v13, %v15_v13  ;;  %v341_v20 = vld [vmem:[%s437_s1 + $0x78] sm:$0xff]   ;;  %v269_v22 = vcombine.low %v15_v13, %v15_v13  ;;  %v268_v29 = vld [vmem:[%s439_s2] ss:$0 sm:$0xff] }
   0x8   :  { %295 = vmatprep.subr.bf16.mxu0 %v330_v5  ;;  %v342_v21 = vld [vmem:[%s437_s1 + $0x38] sm:$0xff]  }
   0x9   :  { %214 = vmatprep.mubr.bf16.mxu0 %v270_v14  ;;  %319 = vmatpush3.bf16.msra.mxu1 %v346_v15 }
   0xb   :  { %296 = vmatpush3.bf16.msra.mxu0 %v331_v6 }
   0xc   :  { %297 = vmatprep.subr.bf16.mxu0 %v332_v7  ;;  %321 = vmatmul.mubr.msk.bf16.vlgmr.msra.gmra.mrb[0].mxu1 %vm178_vm1, %v345_v18 }
   0xf   :  { %298 = vmatpush3.bf16.msra.mxu0 %v333_v8 }
  0x10   :  { %299 = vmatprep.subr.bf16.mxu0 %v334_v9 }
  0x13   :  { %300 = vmatpush3.bf16.msra.mxu0 %v335_v11 }
  0x14   :  { %301 = vmatprep.subr.bf16.mxu0 %v336_v12 }
  0x17   :  { %302 = vmatpush3.bf16.msra.mxu0 %v337_v16 }
  0x18   :  { %303 = vmatprep.subr.bf16.mxu0 %v338_v17 }
  0x1b   :  { %304 = vmatpush3.bf16.msra.mxu0 %v339_v19 }
  0x1c   :  { %305 = vmatprep.subr.bf16.mxu0 %v341_v20 }
  0x1f   :  { %306 = vmatpush3.bf16.msra.mxu0 %v342_v21 }
  0x22   :  { %215 = vmatmul.mubr.bf16.vlgmr.msra.gmra.mrb[0].mxu0 %v269_v22 }
  0xdf   :  { %v256_v23 = vpop.f32.mrb[0].mxu1 }
  0xe0   :  { %v322_v24 = vpop.f32.mrb[1].mxu1 }
  0xe1   :  { %v259_v25 = vpop.f32.mrb[2].mxu1 }
  0xe2   :  { %v323_v26 = vpop.f32.mrb[3].mxu1 }
  0xf5   :  { %v307_v27 = vpop.f32.mrb[0].mxu0 }
  0xf6   :  { %v308_v28 = vpop.f32.mrb[1].mxu0 }
  0xf7   :  { %v309_v30 = vadd.f32 %v308_v28, %v307_v27  ;;  %v310_v31 = vpop.f32.mrb[2].mxu0 }
  0xf8   :  { %v311_v32 = vpop.f32.mrb[3].mxu0 }
  0xf9   :  { %v217_v33 = vadd.f32 %v309_v30, %v268_v29 }
  0xfb   :  { %v257_v34 = vadd.f32 %v256_v23, %v217_v33 }
  0xfd   :  { %v262_v35 = vmax.f32 %v257_v34, 0.0 }
  0xff   :  { %263 = vst.msk [vmem:[%s440_s3] sm:$0xff] %vm178_vm1, %v262_v35 }

// kernel: net_forward.16
= control target key start
LH: loop header
LB: loop body
LE: loop exit
PB: predicated region body
PF: predicated region fallthrough
CT: control target
= control target key end

     0   :  { %s404_s12 = smov 0   ;;  %s433_s0 = inlined_call_operand.vmem [shape: bf16[32,48], index: 0, kind: input, shape index: {}]   ;;  %s434_s1 = inlined_call_operand.vmem [shape: bf16[48,32], index: 1, kind: input, shape index: {}]   ;;  %s435_s2 = inlined_call_operand.vmem [shape: f32[1,32], index: 2, kind: input, shape index: {}]   ;;  %s436_s3 = inlined_call_operand.vmem [shape: bf16[32,32], index: 3, kind: output, shape index: {}]  }
   0x1 LB: > { %s325_s13 = sadd.s32 4294967295, %s380_s12   ;;  %p329_p0 = scmp.ge.s32.totalorder %s380_s12, 1  ;;  %s380_s12 = sphi %s404_s12, %s13_s12  }
   0x2   : > { %p138_p1 = scmp.lt.s32.totalorder %s380_s12, 3 }
   0x4   : > { %p139_p2 = pnand %p329_p0, %p138_p1 }
   0x5   : > { %v370_v0 = vld [vmem:[%s434_s1] sm:$0xff] (!%p139_p2)   ;;  %v382_v1 = vmov (!%p139_p2), 0.0   ;;  %v371_v2 = vld [vmem:[%s434_s1 + $0x8] sm:$0xff] (!%p139_p2)   ;;  %vm383_vm0 = vmmov (!%p139_p2), 0   ;;  %s330_s18 = sshll.u32 (!%p139_p2), %s325_s13, 1  ;;  %v372_v3 = vld [vmem:[%s434_s1 + $0x10] sm:$0xff] (!%p139_p2)  }
   0x6   : > { %142 = sbr.rel (%p139_p2) target bundleno = 237 (0xed), region = 32  ;;  %350 = vmatprep.subr.bf16.mxu0 (!%p139_p2), %v382_v1  ;;  %356 = vmatprep.mubr.msk.bf16.mxu0 (!%p139_p2), %vm383_vm0, %v382_v1  ;;  %p163_p3 = scmp.lt.s32.totalorder (!%p139_p2), %s330_s18, 3  ;;  %vm213_vm1 = vcmask (!%p139_p2), 392192   ;;  %v334_v5 = vld [vmem:[%s435_s2] ss:$0 sm:$0xff] (!%p139_p2)  ;;  %vm266_vm2 = vcmask (!%p139_p2), 257024  }
   0x7   : > { %351 = vmatpush3.bf16.msra.mxu0 (!%p139_p2), %v370_v0 }
   0x8   : > { %352 = vmatprep.subr.bf16.mxu0 (!%p139_p2), %v382_v1 }
   0xb   : > { %353 = vmatpush3.bf16.msra.mxu0 (!%p139_p2), %v371_v2 }
   0xc   : > { %354 = vmatprep.subr.bf16.mxu0 (!%p139_p2), %v382_v1 }
   0xd   : > { %s438_s18 = smov (!%p163_p3, %s330_s18), 3 }
   0xe   : > { %s331_s21 = sshll.u32 %s438_s18, 2 }
   0xf   : > { %s166_s24 = scalar_lea.vmem %s433_s0, %s331_s21  ;;  %355 = vmatpush3.bf16.msra.mxu0 %v372_v3  ;;  %s172_s29 = scalar_lea.vmem %s436_s3, %s331_s21 }
  0x10   : > { %v373_v4 = vld [vmem:[%s166_s24] sm:$0xff]  }
  0x12   : > { %357 = vmatmul.mubr.msk.bf16.vlgmr.msra.gmra.mrb[0].mxu0 %vm213_vm1, %v373_v4 }
  0xe5   : > { %v251_v6 = vpop.f32.mrb[0].mxu0 }
  0xe6   : > { %v252_v7 = vadd.f32 %v334_v5, %v251_v6  ;;  %v358_v8 = vpop.f32.mrb[1].mxu0 }
  0xe7   : > { %v254_v9 = vpop.f32.mrb[2].mxu0 }
  0xe8   : > { %v344_v10 = vpack.c.bf16 %v252_v7, %v252_v7  ;;  %v255_v11 = vadd.f32 %v334_v5, %v254_v9  ;;  %v359_v12 = vpop.f32.mrb[3].mxu0 }
  0xea   : > { %267 = vst.msk [vmem:[%s172_s29] sm:$0xf] %vm266_vm2, %v344_v10  ;;  %v345_v13 = vpack.c.bf16 %v255_v11, %v255_v11 }
  0xec   : > { %268 = vst.msk [vmem:[%s172_s29 + $0x4] sm:$0xf] %vm266_vm2, %v345_v13 }
  0xed PF: > { %s13_s12 = sadd.s32 1, %s380_s12  }
  0xee   : > { %p10_p4 = scmp.ge.s32.totalorder %s13_s12, 4  }
  0xf0   :  { %12 = sbr.rel (!%p10_p4) target bundleno = 1 (0x1), region = 62 }

// kernel: net_forward.17
= control target key start
LH: loop header
LB: loop body
LE: loop exit
PB: predicated region body
PF: predicated region fallthrough
CT: control target
= control target key end

     0   :  { %v304_v0 = vmov 0.0   ;;  %vm305_vm0 = vmmov 0   ;;  %vm48_vm1 = vcmask 261120   ;;  %vm133_vm2 = vcmask 523264   ;;  %s383_s1 = inlined_call_operand.vmem [shape: bf16[32,64], index: 1, kind: input, shape index: {}]   ;;  %s384_s3 = inlined_call_operand.vmem [shape: bf16[64,32], index: 3, kind: input, shape index: {}]   ;;  %s385_s0 = inlined_call_operand.vmem [shape: bf16[8,32], index: 0, kind: input, shape index: {}]   ;;  %s386_s5 = inlined_call_operand.vmem [shape: bf16[32,32], index: 5, kind: input, shape index: {}]   ;;  %s387_s2 = inlined_call_operand.vmem [shape: f32[1,64], index: 2, kind: input, shape index: {}]   ;;  %s388_s4 = inlined_call_operand.vmem [shape: f32[1,32], index: 4, kind: input, shape index: {}]   ;;  %s389_s6 = inlined_call_operand.vmem [shape: f32[8,32], index: 6, kind: output, shape index: {}]  }
   0x1   :  { %266 = vmatprep.subr.bf16.mxu0 %v304_v0  ;;  %v296_v1 = vld [vmem:[%s383_s1] sm:$0xff]   ;;  %270 = vmatprep.mubr.msk.bf16.mxu0 %vm305_vm0, %v304_v0  ;;  %v297_v2 = vld [vmem:[%s383_s1 + $0x8] sm:$0xff]   ;;  %v300_v6 = vld [vmem:[%s384_s3 + $0x10] sm:$0xff]  }
   0x2   :  { %274 = vmatprep.subr.bf16.mxu1 %v304_v0  ;;  %282 = vmatprep.mubr.msk.bf16.mxu1 %vm305_vm0, %v304_v0  ;;  %v298_v3 = vld [vmem:[%s384_s3] sm:$0xff]   ;;  %v299_v4 = vld [vmem:[%s384_s3 + $0x8] sm:$0xff]   ;;  %v301_v7 = vld [vmem:[%s384_s3 + $0x18] sm:$0xff]  }
   0x3   :  { %267 = vmatpush3.bf16.msra.mxu0 %v296_v1  ;;  %275 = vmatpush3.bf16.msra.mxu1 %v298_v3  ;;  %v24_v5 = vld [vmem:[%s385_s0] sm:$0xf]  ;;  %v303_v17 = vld [vmem:[%s386_s5 + $0x8] sm:$0xff]  }
   0x4   :  { %268 = vmatprep.subr.bf16.mxu0 %v304_v0  ;;  %276 = vmatprep.subr.bf16.mxu1 %v304_v0  ;;  %v302_v8 = vld [vmem:[%s386_s5] sm:$0xff]  }
   0x5   :  { %v242_v9 = vld [vmem:[%s387_s2] ss:$0 sm:$0xff] }
   0x6   :  { %v246_v18 = vld [vmem:[%s388_s4] ss:$0 sm:$0xff] }
   0x7   :  { %269 = vmatpush3.bf16.msra.mxu0 %v297_v2  ;;  %277 = vmatpush3.bf16.msra.mxu1 %v299_v4 }
   0x8   :  { %286 = vmatprep.subr.bf16.mxu0 %v304_v0  ;;  %278 = vmatprep.subr.bf16.mxu1 %v304_v0 }
   0xa   :  { %271 = vmatmul.mubr.msk.bf16.vlgmr.msra.gmra.mrb[0].mxu0 %vm48_vm1, %v24_v5 }
   0xb   :  { %290 = vmatprep.mubr.msk.bf16.mxu0 %vm305_vm0, %v304_v0  ;;  %279 = vmatpush3.bf16.msra.mxu1 %v300_v6 }
   0xc   :  { %280 = vmatprep.subr.bf16.mxu1 %v304_v0  ;;  %287 = vmatpush3.bf16.msra.mxu0 %v302_v8 }
   0xd   :  { %288 = vmatprep.subr.bf16.mxu0 %v304_v0 }
   0xf   :  { %281 = vmatpush3.bf16.msra.mxu1 %v301_v7 }
  0x10   :  { %289 = vmatpush3.bf16.msra.mxu0 %v303_v17 }
  0xdd   :  { %v86_v10 = vpop.f32.mrb[0].mxu0 }
  0xde   :  { %v87_v11 = vadd.f32 %v242_v9, %v86_v10  ;;  %v272_v12 = vpop.f32.mrb[1].mxu0 }
  0xdf   :  { %v89_v13 = vpop.f32.mrb[2].mxu0 }
  0xe0   :  { %v92_v14 = vmax.f32 %v87_v11, 0.0  ;;  %v273_v15 = vpop.f32.mrb[3].mxu0 }
  0xe2   :  { %v93_v16 = vpack.c.bf16 %v92_v14, %v92_v14 }
  0xe4   :  { %283 = vmatmul.mubr.msk.bf16.vlgmr.msra.gmra.mrb[0].mxu1 %vm133_vm2, %v93_v16 }
 0x1b7   :  { %v171_v19 = vpop.f32.mrb[0].mxu1 }
 0x1b8   :  { %v172_v20 = vadd.f32 %v246_v18, %v171_v19  ;;  %v284_v21 = vpop.f32.mrb[1].mxu1 }
 0x1b9   :  { %v174_v22 = vpop.f32.mrb[2].mxu1 }
 0x1ba   :  { %v177_v23 = vpack.c.bf16 %v172_v20, %v172_v20  ;;  %v285_v24 = vpop.f32.mrb[3].mxu1 }
 0x1bc   :  { %291 = vmatmul.mubr.msk.bf16.vlgmr.msra.gmra.mrb[4].mxu0 %vm48_vm1, %v177_v23 }
 0x28f   :  { %v231_v25 = vpop.f32.mrb[4].mxu0 }
 0x290   :  { %237 = vst.msk [vmem:[%s389_s6] sm:$0xff] %vm48_vm1, %v231_v25  ;;  %v292_v26 = vpop.f32.mrb[5].mxu0 }
 0x291   :  { %v234_v27 = vpop.f32.mrb[6].mxu0 }
 0x292   :  { %v293_v28 = vpop.f32.mrb[7].mxu0 }

// kernel: net_forward.18
= control target key start
LH: loop header
LB: loop body
LE: loop exit
PB: predicated region body
PF: predicated region fallthrough
CT: control target
= control target key end

     0   :  { %s576_s21 = smov 0   ;;  %s620_s0 = inlined_call_operand.vmem [shape: bf16[32,32], index: 0, kind: input, shape index: {}]   ;;  %s621_s1 = inlined_call_operand.vmem [shape: f32[1,32], index: 1, kind: input, shape index: {}]   ;;  %s622_s2 = inlined_call_operand.vmem [shape: bf16[32,32], index: 2, kind: input, shape index: {}]   ;;  %s623_s3 = inlined_call_operand.vmem [shape: f32[1,32], index: 3, kind: input, shape index: {}]   ;;  %s624_s4 = inlined_call_operand.vmem [shape: bf16[32,48], index: 4, kind: input, shape index: {}]   ;;  %s625_s5 = inlined_call_operand.vmem [shape: f32[1,48], index: 5, kind: input, shape index: {}]   ;;  %s626_s6 = inlined_call_operand.vmem [shape: f32[32,48], index: 6, kind: output, shape index: {}]  }
   0x1 LB: > { %s469_s22 = sadd.s32 4294967295, %s537_s21   ;;  %p473_p0 = scmp.ge.s32.totalorder %s537_s21, 1  ;;  %s537_s21 = sphi %s576_s21, %s16_s21  }
   0x2   : > { %p213_p1 = scmp.lt.s32.totalorder %s537_s21, 3 }
   0x4   : > { %p214_p2 = pnand %p473_p0, %p213_p1 }
   0x5   : > { %v522_v0 = vld [vmem:[%s622_s2] sm:$0xff] (!%p214_p2)   ;;  %v539_v1 = vmov (!%p214_p2), 0.0   ;;  %v523_v2 = vld [vmem:[%s622_s2 + $0x8] sm:$0xff] (!%p214_p2)   ;;  %vm540_vm0 = vmmov (!%p214_p2), 0   ;;  %s474_s27 = sshll.u32 (!%p214_p2), %s469_s22, 1  ;;  %vm286_vm1 = vcmask (!%p214_p2), 261120  }
   0x6   : > { %217 = sbr.rel (%p214_p2) target bundleno = 465 (0x1d1), region = 44  ;;  %496 = vmatprep.subr.bf16.mxu0 (!%p214_p2), %v539_v1  ;;  %504 = vmatprep.subr.bf16.mxu1 (!%p214_p2), %v539_v1  ;;  %p244_p3 = scmp.lt.s32.totalorder (!%p214_p2), %s474_s27, 3  ;;  %v525_v4 = vld [vmem:[%s624_s4] sm:$0xff] (!%p214_p2)   ;;  %v526_v5 = vld [vmem:[%s624_s4 + $0x8] sm:$0xff] (!%p214_p2)   ;;  %vm410_vm2 = vcmask (!%p214_p2), 392192  }
   0x7   : > { %497 = vmatpush3.bf16.msra.mxu0 (!%p214_p2), %v522_v0  ;;  %500 = vmatprep.mubr.msk.bf16.mxu0 (!%p214_p2), %vm540_vm0, %v539_v1  ;;  %v478_v6 = vld [vmem:[%s621_s1] ss:$0 sm:$0xff] (!%p214_p2) }
   0x8   : > { %498 = vmatprep.subr.bf16.mxu0 (!%p214_p2), %v539_v1  ;;  %508 = vmatprep.mubr.msk.bf16.mxu1 (!%p214_p2), %vm540_vm0, %v539_v1  ;;  %v483_v8 = vld [vmem:[%s623_s3] ss:$0 sm:$0xff] (!%p214_p2) }
   0x9   : > { %505 = vmatpush3.bf16.msra.mxu1 (!%p214_p2), %v525_v4  ;;  %v484_v19 = vld [vmem:[%s625_s5] ss:$0 sm:$0xff] (!%p214_p2) }
   0xa   : > { %506 = vmatprep.subr.bf16.mxu1 (!%p214_p2), %v539_v1 }
   0xb   : > { %499 = vmatpush3.bf16.msra.mxu0 (!%p214_p2), %v523_v2 }
   0xd   : > { %s628_s27 = smov (!%p244_p3, %s474_s27), 3  ;;  %507 = vmatpush3.bf16.msra.mxu1 %v526_v5 }
   0xe   : > { %s475_s28 = sshll.u32 %s628_s27, 2  ;;  %s477_s16 = sshll.u32 %s628_s27, 3 }
   0xf   : > { %s247_s7 = scalar_lea.vmem %s620_s0, %s475_s28  ;;  %s253_s22 = scalar_lea.vmem %s626_s6, %s477_s16 }
  0x10   : > { %v524_v3 = vld [vmem:[%s247_s7] sm:$0xff]  }
  0x11   : > { %501 = vmatmul.mubr.msk.bf16.vlgmr.msra.gmra.mrb[0].mxu0 %vm286_vm1, %v524_v3 }
  0xe4   : > { %v324_v7 = vpop.f32.mrb[0].mxu0 }
  0xe5   : > { %v325_v9 = vadd.f32 %v478_v6, %v324_v7  ;;  %v502_v10 = vpop.f32.mrb[1].mxu0 }
  0xe6   : > { %v327_v11 = vpop.f32.mrb[2].mxu0 }
  0xe7   : > { %v338_v12 = vadd.f32 %v483_v8, %v325_v9  ;;  %v328_v13 = vadd.f32 %v478_v6, %v327_v11  ;;  %v503_v14 = vpop.f32.mrb[3].mxu0 }
  0xe9   : > { %v339_v15 = vadd.f32 %v483_v8, %v328_v13  ;;  %527 = vtanh.f32 %v338_v12 }
  0xeb   : > { %529 = vtanh.f32 %v339_v15 }
  0xf3   : > { %v528_v16 = vpop.eup %527 }
  0xf5   : > { %v530_v17 = vpop.eup %529 }
  0xf6   : > { %v342_v18 = vpack.c.bf16 %v530_v17, %v528_v16 }
  0xf8   : > { %509 = vmatmul.mubr.msk.bf16.vlgmr.msra.gmra.mrb[0].mxu1 %vm286_vm1, %v342_v18 }
 0x1cb   : > { %v403_v20 = vpop.f32.mrb[0].mxu1 }
 0x1cc   : > { %v404_v21 = vadd.f32 %v484_v19, %v403_v20  ;;  %v510_v22 = vpop.f32.mrb[1].mxu1 }
 0x1cd   : > { %v406_v23 = vpop.f32.mrb[2].mxu1 }
 0x1ce   : > { %411 = vst.msk [vmem:[%s253_s22] sm:$0xff] %vm410_vm2, %v404_v21  ;;  %v407_v24 = vadd.f32 %v484_v19, %v406_v23  ;;  %v511_v25 = vpop.f32.mrb[3].mxu1 }
 0x1d0   : > { %412 = vst.msk [vmem:[%s253_s22 + $0x8] sm:$0xff] %vm410_vm2, %v407_v24 }
 0x1d1 PF: > { %s16_s21 = sadd.s32 1, %s537_s21  }
 0x1d2   : > { %p13_p4 = scmp.ge.s32.totalorder %s16_s21, 4  }
 0x1d4   :  { %15 = sbr.rel (!%p13_p4) target bundleno = 1 (0x1), region = 74 }

// kernel: net_forward.23
= control target key start
LH: loop header
LB: loop body
LE: loop exit
PB: predicated region body
PF: predicated region fallthrough
CT: control target
= control target key end

     0   :  { %s117_s0 = inlined_call_operand.vmem [shape: f32[8,128], index: 0, kind: input, shape index: {}]   ;;  %s118_s1 = inlined_call_operand.vmem [shape: f32[8,128], index: 1, kind: input, shape index: {}]   ;;  %s119_s2 = inlined_call_operand.hbm [shape: f32[1,1], index: 2, kind: output, shape index: {}]  }
   0x1   :  { %v17_v0 = vld [vmem:[%s117_s0] sm:$0xff] }
   0x2   :  { %v18_v1 = vld [vmem:[%s118_s1] sm:$0xff] }
   0x3   :  { %7 = vsyncpa [#allocation4], 0  ;;  %v19_v2 = vsub.f32 %v17_v0, %v18_v1  ;;  %s83_s13 = smov [#allocation3]   ;;  %vm40_vm0 = vcmask 0  }
   0x4   :  { %s48_s14 = sshll.u32 %s83_s13, 4  ;;  %s49_s14 = int_to_ptr.vmem [resolvable:$true] %s48_s14 }
   0x5   :  { %v20_v3 = vmul.f32 %v19_v2, %v19_v2  ;;  %s59_s0 = scalar_lea.vmem %s49_s14, 16  ;;  %s63_s1 = scalar_lea.vmem %s49_s14, 32 }
   0x6   :  { %p60_p0 = scmp.ne.s32.totalorder %s49_s14, %s59_s0  ;;  %p64_p1 = scmp.lt.s32.totalorder %s49_s14, %s49_s14 }
   0x7   :  { %29 = vadd.xlane.f32.xlu0 %v20_v3  ;;  %p65_p2 = scmp.lt.s32.totalorder %s63_s1, %s59_s0 }
   0x9   :  { %p66_p3 = por %p65_p2, %p64_p1 }
   0xb   :  { %p67_p4 = pnand %p66_p3, %p60_p0 }
  0x94   :  { %v30_v4 = vpop.xlane.xlu0 %29 }
  0x95   :  { %v31_v5 = vrot.slane %v30_v4, 4 }
  0x97   :  { %v32_v6 = vadd.f32 %v31_v5, %v30_v4 }
  0x99   :  { %v33_v7 = vrot.slane %v32_v6, 2 }
  0x9b   :  { %v34_v8 = vadd.f32 %v33_v7, %v32_v6 }
  0x9d   :  { %v35_v9 = vrot.slane %v34_v8, 1 }
  0x9f   :  { %v36_v10 = vadd.f32 %v35_v9, %v34_v8 }
  0xa1   :  { %56 = vpush %v36_v10 }
  0xd2   :  { %s57_s15 = spop %56 }
  0xd3   :  { %v38_v11 = vstv %s57_s15 }
  0xd4   :  { %v39_v12 = vmul.f32 0.00390625, %v38_v11 }
  0xd6   :  { %41 = vst.msk [vmem:[#allocation3] sm:$0x1] %vm40_vm0, %v39_v12 }
  0xd7   :  { %70 = shalt.err (!%p67_p4)
}
  0xd8   :  { %s71_s18 = scalar_lea.hbm %s119_s2, 16 }
  0xd9   :  { %p72_p5 = scmp.ne.s32.totalorder %s119_s2, %s71_s18  ;;  %p75_p6 = scmp.lt.u32.totalorder %s71_s18, %s119_s2 }
  0xdb   :  { %p77_p7 = pnand %p75_p6, %p72_p5 }
  0xdd   :  { %80 = shalt.err (!%p77_p7)
}
  0xde   :  { %51 = dma.vmem_to_hbm [thread:$0]  %s49_s14, 16, %s119_s2, [#allocation4]  }
  0xdf   :  { %81 = dma.done.wait [#allocation4], 16  }
  0xe0   :  { %82 = vsyncadd [#allocation4], 4294967280 }
  0xe1   :  { %55 = vsyncpa [#allocation4], 1 }

</bundles_post_ra>
